<compile_context>
chip_gen: v7x
topology: tpu7x:2x2x1
jax: 0.10.0
libtpu: 0.0.40
codegen_flags: <defaults>
</compile_context>

<pallas_src>
import functools
import math

import numpy as np
import jax
import jax.numpy as jnp
from jax import lax
from jax.experimental import pallas as pl
from jax.experimental.pallas import tpu as pltpu

_LANES = 128


def _round_up(v, m):
    return (v + m - 1) // m * m


# ----------------------------------------------------------------------------
# Fused kernel: whole GravNetBlock forward for ONE graph (grid axis = graph).
# ----------------------------------------------------------------------------
def _gravnet_block_kernel(x_ref, w_ref, o_ref, *, layout, conv_names, k,
                          out_channels):
    def p(name):
        row, lane, r, c = layout[name]
        band = w_ref[row:row + r, :]          # sublane-aligned static slice
        return band[:, lane:lane + c]         # value-level lane slice

    def dense(x, name, relu):
        y = jnp.dot(x, p(name + "_w"), preferred_element_type=jnp.float32)
        y = y + p(name + "_b")
        return jnp.maximum(y, 0.0) if relu else y

    x = x_ref[...]                            # [N, Cin]
    n = x.shape[0]

    col = lax.broadcasted_iota(jnp.int32, (n, n), 1)
    row = lax.broadcasted_iota(jnp.int32, (n, n), 0)
    diag = col == row
    diagf = diag.astype(jnp.float32)
    ones_nn = jnp.ones((n, n), jnp.float32)
    ones_n1 = jnp.ones((n, 1), jnp.float32)
    ones_1n = jnp.ones((1, n), jnp.float32)
    ones_3n = jnp.ones((3, n), jnp.float32)
    big = jnp.float32(1e30)
    neg = jnp.float32(-1e30)

    def conv(x, name):
        # learned 3-D coords + propagated feature in one matmul: [N, 3 + 1]
        sh = jnp.dot(x, p(name + "_swh_w"), preferred_element_type=jnp.float32)
        sh = sh + p(name + "_swh_b")
        s = sh[:, 0:3]                                          # [N, 3]
        h = sh[:, 3:4]                                          # [N, 1]

        # pairwise squared distances; all transposes folded into MXU matmuls
        g = lax.dot_general(s, s, (((1,), (1,)), ((), ())),
                            preferred_element_type=jnp.float32)          # s @ s^T
        col_sq = jnp.dot(s * s, ones_3n,
                         preferred_element_type=jnp.float32)             # [i,j] = ||s_i||^2
        row_sq = jnp.dot(ones_nn, diagf * col_sq,
                         preferred_element_type=jnp.float32)             # [i,j] = ||s_j||^2
        d = jnp.maximum(col_sq + row_sq - 2.0 * g, 0.0)                  # [N, N]

        # kNN mask: self neighbour analytic, one lane-reduction per pass
        mask = diag
        d_work = jnp.where(diag, big, d)
        for _ in range(k - 1):                                  # static, tiny
            row_min = jnp.min(d_work, axis=1, keepdims=True)
            sel = d_work <= row_min          # >1 picked only on exact ties
            mask = jnp.logical_or(mask, sel)
            d_work = jnp.where(sel, big, d_work)
        maskf = mask.astype(jnp.float32)

        w_edge = jnp.exp(-10.0 * d)                             # [N, N]

        # mean aggregation on the MXU; divide by the actual neighbour count
        cnt = jnp.dot(maskf, ones_n1, preferred_element_type=jnp.float32)
        mean_agg = jnp.dot(w_edge * maskf, h,
                           preferred_element_type=jnp.float32) / cnt     # [N, 1]

        # max aggregation; h^T row-broadcast built from MXU matmuls (no XLU)
        h_col = jnp.dot(h, ones_1n, preferred_element_type=jnp.float32)  # [i,j] = h_i
        h_row = jnp.dot(ones_nn, diagf * h_col,
                        preferred_element_type=jnp.float32)              # [i,j] = h_j
        max_agg = jnp.max(jnp.where(mask, w_edge * h_row, neg),
                          axis=1, keepdims=True)                         # [N, 1]

        # lin_out(concat([x, mean, max])) with pre-split weight rows
        out = jnp.dot(x, p(name + "_wox"), preferred_element_type=jnp.float32)
        out = out + jnp.dot(mean_agg, p(name + "_wom"),
                            preferred_element_type=jnp.float32)
        out = out + jnp.dot(max_agg, p(name + "_woM"),
                            preferred_element_type=jnp.float32)
        out = out + p(name + "_bo")
        return out

    x = dense(x, "dense1", relu=False)
    x = dense(x, "dense2", relu=True)
    x = dense(x, "dense3", relu=True)
    for cn in conv_names:
        x = conv(x, cn)
    x = dense(x, "dense4", relu=True)
    x = dense(x, "dense5", relu=True)
    x = dense(x, "dense6", relu=True)

    pad = o_ref.shape[1] - out_channels
    if pad:  # full-lane (unmasked) store; padding sliced off outside the kernel
        x = jnp.concatenate([x, jnp.zeros((n, pad), jnp.float32)], axis=1)
    o_ref[...] = x


# ----------------------------------------------------------------------------
# Wrapper: single pallas_call, grid over the graph batch
# ----------------------------------------------------------------------------
def gravnet_block_forward(inputs, slab, layout, conv_names, out_channels, *, k=3):
    # inputs: [B, N, ...]  (B independent graphs of N nodes each)
    b, n = inputs.shape[0], inputs.shape[1]
    x = inputs.reshape(b, n, -1).astype(jnp.float32)     # per-graph view(N, -1)
    cin = x.shape[-1]
    out_lanes = max(_LANES, _round_up(out_channels, _LANES))

    kernel = functools.partial(_gravnet_block_kernel, layout=layout,
                               conv_names=conv_names, k=k,
                               out_channels=out_channels)
    out = pl.pallas_call(
        kernel,
        out_shape=jax.ShapeDtypeStruct((b, n, out_lanes), jnp.float32),
        grid_spec=pltpu.PrefetchScalarGridSpec(
            num_scalar_prefetch=0,
            grid=(b,),
            in_specs=[
                pl.BlockSpec((None, n, cin), lambda g: (g, 0, 0)),
                # constant block index: slab DMA'd once, resident across grid
                pl.BlockSpec(slab.shape, lambda g: (0, 0)),
            ],
            out_specs=pl.BlockSpec((None, n, out_lanes), lambda g: (g, 0, 0)),
        ),
        compiler_params=pltpu.CompilerParams(
            dimension_semantics=("parallel",)),
    )(x, slab)
    return out[:, :, :out_channels]


# ----------------------------------------------------------------------------
# Parameter construction + lane-packed slab (torch-Linear-like uniform init)
# ----------------------------------------------------------------------------
def _init_linear(key, fan_in, fan_out):
    k1, k2 = jax.random.split(key)
    bound = 1.0 / math.sqrt(fan_in)
    w = jax.random.uniform(k1, (fan_in, fan_out), jnp.float32, -bound, bound)
    b = jax.random.uniform(k2, (1, fan_out), jnp.float32, -bound, bound)
    return w, b


def init_gravnet_block(key, in_channels, out_channels):
    keys = jax.random.split(key, 12)
    c = out_channels
    entries = []

    def add_dense(name, kk, fi, fo):
        w, b = _init_linear(kk, fi, fo)
        entries.append((name + "_w", w))
        entries.append((name + "_b", b))

    def add_conv(name, kk, cin, cout):
        k1, k2, k3 = jax.random.split(kk, 3)
        ws, bs = _init_linear(k1, cin, 3)            # lin_s
        wh, bh = _init_linear(k2, cin, 1)            # lin_h
        wo, bo = _init_linear(k3, cin + 2, cout)     # lin_out on [x, mean, max]
        entries.append((name + "_swh_w", jnp.concatenate([ws, wh], axis=1)))
        entries.append((name + "_swh_b", jnp.concatenate([bs, bh], axis=1)))
        entries.append((name + "_wox", wo[:cin, :]))          # pre-split lin_out
        entries.append((name + "_wom", wo[cin:cin + 1, :]))
        entries.append((name + "_woM", wo[cin + 1:cin + 2, :]))
        entries.append((name + "_bo", bo))

    add_dense("dense1", keys[0], in_channels, c)
    add_dense("dense2", keys[1], c, c)
    add_dense("dense3", keys[2], c, c)
    conv_dims = [(c, c), (c, c), (c, c // 2), (c // 2, c // 2),
                 (c // 2, c // 4), (c // 4, c // 4)]
    conv_names = []
    for i, (ci, co) in enumerate(conv_dims):
        name = f"conv{i + 1}"
        conv_names.append(name)
        add_conv(name, keys[3 + i], ci, co)
    add_dense("dense4", keys[9], c // 4, c)
    add_dense("dense5", keys[10], c, c)
    add_dense("dense6", keys[11], c, c)

    # Lane-packed slab: entries with the same 8-aligned row height share a
    # 128-lane band; every band starts at a sublane-aligned (multiple-of-8)
    # row offset, so all in-kernel row slices are aligned.
    layout = {}
    bands = {}                 # padded_rows -> [band_row_off, lane_cursor]
    placements = []
    total_rows = 0
    for name, arr in entries:
        r, cc = arr.shape
        r_pad = _round_up(r, 8)
        band = bands.get(r_pad)
        if band is None or band[1] + cc > _LANES:
            band = [total_rows, 0]
            bands[r_pad] = band
            total_rows += r_pad
        row_off, lane_off = band[0], band[1]
        band[1] += cc
        layout[name] = (row_off, lane_off, r, cc)
        placements.append((row_off, lane_off, np.asarray(arr, np.float32)))

    slab_np = np.zeros((total_rows, _LANES), np.float32)
    for row_off, lane_off, arr in placements:
        r, cc = arr.shape
        slab_np[row_off:row_off + r, lane_off:lane_off + cc] = arr
    slab = jnp.asarray(slab_np)
    return slab, layout, tuple(conv_names)


# ----------------------------------------------------------------------------
if __name__ == "__main__":
    key = jax.random.PRNGKey(0)
    k_in, k_par = jax.random.split(key)

    # B=4 independent graphs, N=8 nodes, per-node raw input [4, 2, 2] -> 16ch
    B, N, C, H, W = 4, 8, 4, 2, 2
    in_channels = C * H * W      # 16
    out_channels = 32            # divisible by 4 as the module requires

    inputs = jax.random.normal(k_in, (B, N, C, H, W), dtype=jnp.float32)
    slab, layout, conv_names = init_gravnet_block(k_par, in_channels, out_channels)

    out = gravnet_block_forward(inputs, slab, layout, conv_names, out_channels, k=3)
    out = jax.block_until_ready(out)
    assert out.shape == (B, N, out_channels)
    assert bool(jnp.all(jnp.isfinite(out)))
    print("KERNEL_OK")
</pallas_src>

<mosaic_0001>
module attributes {stable_mosaic.version = 11 : i64} {
  func.func @_gravnet_block_kernel(%arg0: i32, %arg1: memref<1x8x16xf32, #tpu.memory_space<vmem>>, %arg2: memref<128x128xf32, #tpu.memory_space<vmem>>, %arg3: memref<1x8x128xf32, #tpu.memory_space<vmem>>) attributes {dimension_semantics = [#tpu.dimension_semantics<parallel>], iteration_bounds = array<i64: 4>, scalar_prefetch = 0 : i64, scratch_operands = 0 : i64, tpu.core_type = #tpu.core_type<tc>, window_params = [{transform_indices = @transform_0, window_bounds = array<i64: 1, 8, 16>}, {pipeline_mode = #tpu.pipeline_mode<synchronous>, transform_indices = @transform_1, window_bounds = array<i64: 128, 128>}, {transform_indices = @transform_2, window_bounds = array<i64: 1, 8, 128>}]} {
    %c0 = arith.constant 0 : index
    %c0_0 = arith.constant 0 : index
    %c0_1 = arith.constant 0 : index
    %0 = vector.load %arg1[%c0, %c0_0, %c0_1] : memref<1x8x16xf32, #tpu.memory_space<vmem>>, vector<1x8x16xf32>
    %1 = vector.shape_cast %0 : vector<1x8x16xf32> to vector<8x16xf32>
    %2 = tpu.iota {dimensions = array<i32: 1>} : vector<8x8xi32>
    %3 = tpu.iota {dimensions = array<i32: 0>} : vector<8x8xi32>
    %4 = arith.cmpi eq, %2, %3 : vector<8x8xi32>
    %5 = arith.extui %4 : vector<8x8xi1> to vector<8x8xi32>
    %6 = arith.sitofp %5 : vector<8x8xi32> to vector<8x8xf32>
    %cst = arith.constant 1.000000e+00 : f32
    %7 = vector.broadcast %cst : f32 to vector<8x8xf32>
    %cst_2 = arith.constant 1.000000e+00 : f32
    %8 = vector.broadcast %cst_2 : f32 to vector<8x1xf32>
    %cst_3 = arith.constant 1.000000e+00 : f32
    %9 = vector.broadcast %cst_3 : f32 to vector<1x8xf32>
    %cst_4 = arith.constant 1.000000e+00 : f32
    %10 = vector.broadcast %cst_4 : f32 to vector<3x8xf32>
    %c0_5 = arith.constant 0 : index
    %c0_6 = arith.constant 0 : index
    %11 = vector.load %arg2[%c0_5, %c0_6] : memref<128x128xf32, #tpu.memory_space<vmem>>, vector<16x128xf32>
    %12 = vector.extract_strided_slice %11 {offsets = [0, 0], sizes = [16, 32], strides = [1, 1]} : vector<16x128xf32> to vector<16x32xf32>
    %cst_7 = arith.constant dense<0.000000e+00> : vector<8x32xf32>
    %13 = tpu.matmul %1, %12, %cst_7 {dimension_numbers = #tpu.dot_dimension_numbers<[1], [0], [0], [1], [0, 0, 1, 1], [], []>} : vector<8x16xf32>, vector<16x32xf32>, vector<8x32xf32> -> vector<8x32xf32>
    %c16 = arith.constant 16 : index
    %c0_8 = arith.constant 0 : index
    %14 = vector.load %arg2[%c16, %c0_8] : memref<128x128xf32, #tpu.memory_space<vmem>>, vector<1x128xf32>
    %15 = vector.extract_strided_slice %14 {offsets = [0, 0], sizes = [1, 32], strides = [1, 1]} : vector<1x128xf32> to vector<1x32xf32>
    %16 = vector.broadcast %15 : vector<1x32xf32> to vector<8x32xf32>
    %17 = arith.addf %13, %16 : vector<8x32xf32>
    %c24 = arith.constant 24 : index
    %c0_9 = arith.constant 0 : index
    %18 = vector.load %arg2[%c24, %c0_9] : memref<128x128xf32, #tpu.memory_space<vmem>>, vector<32x128xf32>
    %19 = vector.extract_strided_slice %18 {offsets = [0, 0], sizes = [32, 32], strides = [1, 1]} : vector<32x128xf32> to vector<32x32xf32>
    %cst_10 = arith.constant dense<0.000000e+00> : vector<8x32xf32>
    %20 = tpu.matmul %17, %19, %cst_10 {dimension_numbers = #tpu.dot_dimension_numbers<[1], [0], [0], [1], [0, 0, 1, 1], [], []>} : vector<8x32xf32>, vector<32x32xf32>, vector<8x32xf32> -> vector<8x32xf32>
    %c16_11 = arith.constant 16 : index
    %c0_12 = arith.constant 0 : index
    %21 = vector.load %arg2[%c16_11, %c0_12] : memref<128x128xf32, #tpu.memory_space<vmem>>, vector<1x128xf32>
    %22 = vector.extract_strided_slice %21 {offsets = [0, 32], sizes = [1, 32], strides = [1, 1]} : vector<1x128xf32> to vector<1x32xf32>
    %23 = vector.broadcast %22 : vector<1x32xf32> to vector<8x32xf32>
    %24 = arith.addf %20, %23 : vector<8x32xf32>
    %cst_13 = arith.constant 0.000000e+00 : f32
    %25 = vector.broadcast %cst_13 : f32 to vector<8x32xf32>
    %26 = arith.maximumf %24, %25 : vector<8x32xf32>
    %c24_14 = arith.constant 24 : index
    %c0_15 = arith.constant 0 : index
    %27 = vector.load %arg2[%c24_14, %c0_15] : memref<128x128xf32, #tpu.memory_space<vmem>>, vector<32x128xf32>
    %28 = vector.extract_strided_slice %27 {offsets = [0, 32], sizes = [32, 32], strides = [1, 1]} : vector<32x128xf32> to vector<32x32xf32>
    %cst_16 = arith.constant dense<0.000000e+00> : vector<8x32xf32>
    %29 = tpu.matmul %26, %28, %cst_16 {dimension_numbers = #tpu.dot_dimension_numbers<[1], [0], [0], [1], [0, 0, 1, 1], [], []>} : vector<8x32xf32>, vector<32x32xf32>, vector<8x32xf32> -> vector<8x32xf32>
    %c16_17 = arith.constant 16 : index
    %c0_18 = arith.constant 0 : index
    %30 = vector.load %arg2[%c16_17, %c0_18] : memref<128x128xf32, #tpu.memory_space<vmem>>, vector<1x128xf32>
    %31 = vector.extract_strided_slice %30 {offsets = [0, 64], sizes = [1, 32], strides = [1, 1]} : vector<1x128xf32> to vector<1x32xf32>
    %32 = vector.broadcast %31 : vector<1x32xf32> to vector<8x32xf32>
    %33 = arith.addf %29, %32 : vector<8x32xf32>
    %cst_19 = arith.constant 0.000000e+00 : f32
    %34 = vector.broadcast %cst_19 : f32 to vector<8x32xf32>
    %35 = arith.maximumf %33, %34 : vector<8x32xf32>
    %c24_20 = arith.constant 24 : index
    %c0_21 = arith.constant 0 : index
    %36 = vector.load %arg2[%c24_20, %c0_21] : memref<128x128xf32, #tpu.memory_space<vmem>>, vector<32x128xf32>
    %37 = vector.extract_strided_slice %36 {offsets = [0, 64], sizes = [32, 4], strides = [1, 1]} : vector<32x128xf32> to vector<32x4xf32>
    %cst_22 = arith.constant dense<0.000000e+00> : vector<8x4xf32>
    %38 = tpu.matmul %35, %37, %cst_22 {dimension_numbers = #tpu.dot_dimension_numbers<[1], [0], [0], [1], [0, 0, 1, 1], [], []>} : vector<8x32xf32>, vector<32x4xf32>, vector<8x4xf32> -> vector<8x4xf32>
    %c16_23 = arith.constant 16 : index
    %c0_24 = arith.constant 0 : index
    %39 = vector.load %arg2[%c16_23, %c0_24] : memref<128x128xf32, #tpu.memory_space<vmem>>, vector<1x128xf32>
    %40 = vector.extract_strided_slice %39 {offsets = [0, 96], sizes = [1, 4], strides = [1, 1]} : vector<1x128xf32> to vector<1x4xf32>
    %41 = vector.broadcast %40 : vector<1x4xf32> to vector<8x4xf32>
    %42 = arith.addf %38, %41 : vector<8x4xf32>
    %43 = vector.extract_strided_slice %42 {offsets = [0, 0], sizes = [8, 3], strides = [1, 1]} : vector<8x4xf32> to vector<8x3xf32>
    %44 = vector.extract_strided_slice %42 {offsets = [0, 3], sizes = [8, 1], strides = [1, 1]} : vector<8x4xf32> to vector<8x1xf32>
    %cst_25 = arith.constant dense<0.000000e+00> : vector<8x8xf32>
    %45 = tpu.matmul %43, %43, %cst_25 {dimension_numbers = #tpu.dot_dimension_numbers<[1], [1], [0], [0], [0, 0, 1, 0], [], []>} : vector<8x3xf32>, vector<8x3xf32>, vector<8x8xf32> -> vector<8x8xf32>
    %46 = arith.mulf %43, %43 : vector<8x3xf32>
    %cst_26 = arith.constant dense<0.000000e+00> : vector<8x8xf32>
    %47 = tpu.matmul %46, %10, %cst_26 {dimension_numbers = #tpu.dot_dimension_numbers<[1], [0], [0], [1], [0, 0, 1, 1], [], []>} : vector<8x3xf32>, vector<3x8xf32>, vector<8x8xf32> -> vector<8x8xf32>
    %48 = arith.mulf %6, %47 : vector<8x8xf32>
    %cst_27 = arith.constant dense<0.000000e+00> : vector<8x8xf32>
    %49 = tpu.matmul %7, %48, %cst_27 {dimension_numbers = #tpu.dot_dimension_numbers<[1], [0], [0], [1], [0, 0, 1, 1], [], []>} : vector<8x8xf32>, vector<8x8xf32>, vector<8x8xf32> -> vector<8x8xf32>
    %50 = arith.addf %47, %49 : vector<8x8xf32>
    %cst_28 = arith.constant 2.000000e+00 : f32
    %51 = vector.broadcast %cst_28 : f32 to vector<8x8xf32>
    %52 = arith.mulf %51, %45 : vector<8x8xf32>
    %53 = arith.subf %50, %52 : vector<8x8xf32>
    %cst_29 = arith.constant 0.000000e+00 : f32
    %54 = vector.broadcast %cst_29 : f32 to vector<8x8xf32>
    %55 = arith.maximumf %53, %54 : vector<8x8xf32>
    %cst_30 = arith.constant 1.000000e+30 : f32
    %56 = vector.broadcast %cst_30 : f32 to vector<8x8xf32>
    %57 = arith.select %4, %56, %55 : vector<8x8xi1>, vector<8x8xf32>
    %cst_31 = arith.constant dense<0x7F800000> : vector<8xf32>
    %58 = vector.multi_reduction <minimumf>, %57, %cst_31 [1] : vector<8x8xf32> to vector<8xf32>
    %59 = vector.shape_cast %58 : vector<8xf32> to vector<8x1xf32>
    %60 = vector.broadcast %59 : vector<8x1xf32> to vector<8x8xf32>
    %61 = arith.cmpf ole, %57, %60 : vector<8x8xf32>
    %62 = arith.ori %4, %61 : vector<8x8xi1>
    %cst_32 = arith.constant 1.000000e+30 : f32
    %63 = vector.broadcast %cst_32 : f32 to vector<8x8xf32>
    %64 = arith.select %61, %63, %57 : vector<8x8xi1>, vector<8x8xf32>
    %cst_33 = arith.constant dense<0x7F800000> : vector<8xf32>
    %65 = vector.multi_reduction <minimumf>, %64, %cst_33 [1] : vector<8x8xf32> to vector<8xf32>
    %66 = vector.shape_cast %65 : vector<8xf32> to vector<8x1xf32>
    %67 = vector.broadcast %66 : vector<8x1xf32> to vector<8x8xf32>
    %68 = arith.cmpf ole, %64, %67 : vector<8x8xf32>
    %69 = arith.ori %62, %68 : vector<8x8xi1>
    %70 = arith.extui %69 : vector<8x8xi1> to vector<8x8xi32>
    %71 = arith.sitofp %70 : vector<8x8xi32> to vector<8x8xf32>
    %cst_34 = arith.constant -1.000000e+01 : f32
    %72 = vector.broadcast %cst_34 : f32 to vector<8x8xf32>
    %73 = arith.mulf %72, %55 : vector<8x8xf32>
    %74 = math.exp %73 : vector<8x8xf32>
    %cst_35 = arith.constant dense<0.000000e+00> : vector<8x1xf32>
    %75 = tpu.matmul %71, %8, %cst_35 {dimension_numbers = #tpu.dot_dimension_numbers<[1], [0], [0], [1], [0, 0, 1, 1], [], []>} : vector<8x8xf32>, vector<8x1xf32>, vector<8x1xf32> -> vector<8x1xf32>
    %76 = arith.mulf %74, %71 : vector<8x8xf32>
    %cst_36 = arith.constant dense<0.000000e+00> : vector<8x1xf32>
    %77 = tpu.matmul %76, %44, %cst_36 {dimension_numbers = #tpu.dot_dimension_numbers<[1], [0], [0], [1], [0, 0, 1, 1], [], []>} : vector<8x8xf32>, vector<8x1xf32>, vector<8x1xf32> -> vector<8x1xf32>
    %78 = arith.divf %77, %75 : vector<8x1xf32>
    %cst_37 = arith.constant dense<0.000000e+00> : vector<8x8xf32>
    %79 = tpu.matmul %44, %9, %cst_37 {dimension_numbers = #tpu.dot_dimension_numbers<[1], [0], [0], [1], [0, 0, 1, 1], [], []>} : vector<8x1xf32>, vector<1x8xf32>, vector<8x8xf32> -> vector<8x8xf32>
    %80 = arith.mulf %6, %79 : vector<8x8xf32>
    %cst_38 = arith.constant dense<0.000000e+00> : vector<8x8xf32>
    %81 = tpu.matmul %7, %80, %cst_38 {dimension_numbers = #tpu.dot_dimension_numbers<[1], [0], [0], [1], [0, 0, 1, 1], [], []>} : vector<8x8xf32>, vector<8x8xf32>, vector<8x8xf32> -> vector<8x8xf32>
    %82 = arith.mulf %74, %81 : vector<8x8xf32>
    %cst_39 = arith.constant -1.000000e+30 : f32
    %83 = vector.broadcast %cst_39 : f32 to vector<8x8xf32>
    %84 = arith.select %69, %82, %83 : vector<8x8xi1>, vector<8x8xf32>
    %cst_40 = arith.constant dense<0xFF800000> : vector<8xf32>
    %85 = vector.multi_reduction <maximumf>, %84, %cst_40 [1] : vector<8x8xf32> to vector<8xf32>
    %86 = vector.shape_cast %85 : vector<8xf32> to vector<8x1xf32>
    %c24_41 = arith.constant 24 : index
    %c0_42 = arith.constant 0 : index
    %87 = vector.load %arg2[%c24_41, %c0_42] : memref<128x128xf32, #tpu.memory_space<vmem>>, vector<32x128xf32>
    %88 = vector.extract_strided_slice %87 {offsets = [0, 68], sizes = [32, 32], strides = [1, 1]} : vector<32x128xf32> to vector<32x32xf32>
    %cst_43 = arith.constant dense<0.000000e+00> : vector<8x32xf32>
    %89 = tpu.matmul %35, %88, %cst_43 {dimension_numbers = #tpu.dot_dimension_numbers<[1], [0], [0], [1], [0, 0, 1, 1], [], []>} : vector<8x32xf32>, vector<32x32xf32>, vector<8x32xf32> -> vector<8x32xf32>
    %c56 = arith.constant 56 : index
    %c0_44 = arith.constant 0 : index
    %90 = vector.load %arg2[%c56, %c0_44] : memref<128x128xf32, #tpu.memory_space<vmem>>, vector<1x128xf32>
    %91 = vector.extract_strided_slice %90 {offsets = [0, 0], sizes = [1, 32], strides = [1, 1]} : vector<1x128xf32> to vector<1x32xf32>
    %cst_45 = arith.constant dense<0.000000e+00> : vector<8x32xf32>
    %92 = tpu.matmul %78, %91, %cst_45 {dimension_numbers = #tpu.dot_dimension_numbers<[1], [0], [0], [1], [0, 0, 1, 1], [], []>} : vector<8x1xf32>, vector<1x32xf32>, vector<8x32xf32> -> vector<8x32xf32>
    %93 = arith.addf %89, %92 : vector<8x32xf32>
    %c56_46 = arith.constant 56 : index
    %c0_47 = arith.constant 0 : index
    %94 = vector.load %arg2[%c56_46, %c0_47] : memref<128x128xf32, #tpu.memory_space<vmem>>, vector<1x128xf32>
    %95 = vector.extract_strided_slice %94 {offsets = [0, 32], sizes = [1, 32], strides = [1, 1]} : vector<1x128xf32> to vector<1x32xf32>
    %cst_48 = arith.constant dense<0.000000e+00> : vector<8x32xf32>
    %96 = tpu.matmul %86, %95, %cst_48 {dimension_numbers = #tpu.dot_dimension_numbers<[1], [0], [0], [1], [0, 0, 1, 1], [], []>} : vector<8x1xf32>, vector<1x32xf32>, vector<8x32xf32> -> vector<8x32xf32>
    %97 = arith.addf %93, %96 : vector<8x32xf32>
    %c56_49 = arith.constant 56 : index
    %c0_50 = arith.constant 0 : index
    %98 = vector.load %arg2[%c56_49, %c0_50] : memref<128x128xf32, #tpu.memory_space<vmem>>, vector<1x128xf32>
    %99 = vector.extract_strided_slice %98 {offsets = [0, 64], sizes = [1, 32], strides = [1, 1]} : vector<1x128xf32> to vector<1x32xf32>
    %100 = vector.broadcast %99 : vector<1x32xf32> to vector<8x32xf32>
    %101 = arith.addf %97, %100 : vector<8x32xf32>
    %c24_51 = arith.constant 24 : index
    %c0_52 = arith.constant 0 : index
    %102 = vector.load %arg2[%c24_51, %c0_52] : memref<128x128xf32, #tpu.memory_space<vmem>>, vector<32x128xf32>
    %103 = vector.extract_strided_slice %102 {offsets = [0, 100], sizes = [32, 4], strides = [1, 1]} : vector<32x128xf32> to vector<32x4xf32>
    %cst_53 = arith.constant dense<0.000000e+00> : vector<8x4xf32>
    %104 = tpu.matmul %101, %103, %cst_53 {dimension_numbers = #tpu.dot_dimension_numbers<[1], [0], [0], [1], [0, 0, 1, 1], [], []>} : vector<8x32xf32>, vector<32x4xf32>, vector<8x4xf32> -> vector<8x4xf32>
    %c56_54 = arith.constant 56 : index
    %c0_55 = arith.constant 0 : index
    %105 = vector.load %arg2[%c56_54, %c0_55] : memref<128x128xf32, #tpu.memory_space<vmem>>, vector<1x128xf32>
    %106 = vector.extract_strided_slice %105 {offsets = [0, 96], sizes = [1, 4], strides = [1, 1]} : vector<1x128xf32> to vector<1x4xf32>
    %107 = vector.broadcast %106 : vector<1x4xf32> to vector<8x4xf32>
    %108 = arith.addf %104, %107 : vector<8x4xf32>
    %109 = vector.extract_strided_slice %108 {offsets = [0, 0], sizes = [8, 3], strides = [1, 1]} : vector<8x4xf32> to vector<8x3xf32>
    %110 = vector.extract_strided_slice %108 {offsets = [0, 3], sizes = [8, 1], strides = [1, 1]} : vector<8x4xf32> to vector<8x1xf32>
    %cst_56 = arith.constant dense<0.000000e+00> : vector<8x8xf32>
    %111 = tpu.matmul %109, %109, %cst_56 {dimension_numbers = #tpu.dot_dimension_numbers<[1], [1], [0], [0], [0, 0, 1, 0], [], []>} : vector<8x3xf32>, vector<8x3xf32>, vector<8x8xf32> -> vector<8x8xf32>
    %112 = arith.mulf %109, %109 : vector<8x3xf32>
    %cst_57 = arith.constant dense<0.000000e+00> : vector<8x8xf32>
    %113 = tpu.matmul %112, %10, %cst_57 {dimension_numbers = #tpu.dot_dimension_numbers<[1], [0], [0], [1], [0, 0, 1, 1], [], []>} : vector<8x3xf32>, vector<3x8xf32>, vector<8x8xf32> -> vector<8x8xf32>
    %114 = arith.mulf %6, %113 : vector<8x8xf32>
    %cst_58 = arith.constant dense<0.000000e+00> : vector<8x8xf32>
    %115 = tpu.matmul %7, %114, %cst_58 {dimension_numbers = #tpu.dot_dimension_numbers<[1], [0], [0], [1], [0, 0, 1, 1], [], []>} : vector<8x8xf32>, vector<8x8xf32>, vector<8x8xf32> -> vector<8x8xf32>
    %116 = arith.addf %113, %115 : vector<8x8xf32>
    %cst_59 = arith.constant 2.000000e+00 : f32
    %117 = vector.broadcast %cst_59 : f32 to vector<8x8xf32>
    %118 = arith.mulf %117, %111 : vector<8x8xf32>
    %119 = arith.subf %116, %118 : vector<8x8xf32>
    %cst_60 = arith.constant 0.000000e+00 : f32
    %120 = vector.broadcast %cst_60 : f32 to vector<8x8xf32>
    %121 = arith.maximumf %119, %120 : vector<8x8xf32>
    %cst_61 = arith.constant 1.000000e+30 : f32
    %122 = vector.broadcast %cst_61 : f32 to vector<8x8xf32>
    %123 = arith.select %4, %122, %121 : vector<8x8xi1>, vector<8x8xf32>
    %cst_62 = arith.constant dense<0x7F800000> : vector<8xf32>
    %124 = vector.multi_reduction <minimumf>, %123, %cst_62 [1] : vector<8x8xf32> to vector<8xf32>
    %125 = vector.shape_cast %124 : vector<8xf32> to vector<8x1xf32>
    %126 = vector.broadcast %125 : vector<8x1xf32> to vector<8x8xf32>
    %127 = arith.cmpf ole, %123, %126 : vector<8x8xf32>
    %128 = arith.ori %4, %127 : vector<8x8xi1>
    %cst_63 = arith.constant 1.000000e+30 : f32
    %129 = vector.broadcast %cst_63 : f32 to vector<8x8xf32>
    %130 = arith.select %127, %129, %123 : vector<8x8xi1>, vector<8x8xf32>
    %cst_64 = arith.constant dense<0x7F800000> : vector<8xf32>
    %131 = vector.multi_reduction <minimumf>, %130, %cst_64 [1] : vector<8x8xf32> to vector<8xf32>
    %132 = vector.shape_cast %131 : vector<8xf32> to vector<8x1xf32>
    %133 = vector.broadcast %132 : vector<8x1xf32> to vector<8x8xf32>
    %134 = arith.cmpf ole, %130, %133 : vector<8x8xf32>
    %135 = arith.ori %128, %134 : vector<8x8xi1>
    %136 = arith.extui %135 : vector<8x8xi1> to vector<8x8xi32>
    %137 = arith.sitofp %136 : vector<8x8xi32> to vector<8x8xf32>
    %cst_65 = arith.constant -1.000000e+01 : f32
    %138 = vector.broadcast %cst_65 : f32 to vector<8x8xf32>
    %139 = arith.mulf %138, %121 : vector<8x8xf32>
    %140 = math.exp %139 : vector<8x8xf32>
    %cst_66 = arith.constant dense<0.000000e+00> : vector<8x1xf32>
    %141 = tpu.matmul %137, %8, %cst_66 {dimension_numbers = #tpu.dot_dimension_numbers<[1], [0], [0], [1], [0, 0, 1, 1], [], []>} : vector<8x8xf32>, vector<8x1xf32>, vector<8x1xf32> -> vector<8x1xf32>
    %142 = arith.mulf %140, %137 : vector<8x8xf32>
    %cst_67 = arith.constant dense<0.000000e+00> : vector<8x1xf32>
    %143 = tpu.matmul %142, %110, %cst_67 {dimension_numbers = #tpu.dot_dimension_numbers<[1], [0], [0], [1], [0, 0, 1, 1], [], []>} : vector<8x8xf32>, vector<8x1xf32>, vector<8x1xf32> -> vector<8x1xf32>
    %144 = arith.divf %143, %141 : vector<8x1xf32>
    %cst_68 = arith.constant dense<0.000000e+00> : vector<8x8xf32>
    %145 = tpu.matmul %110, %9, %cst_68 {dimension_numbers = #tpu.dot_dimension_numbers<[1], [0], [0], [1], [0, 0, 1, 1], [], []>} : vector<8x1xf32>, vector<1x8xf32>, vector<8x8xf32> -> vector<8x8xf32>
    %146 = arith.mulf %6, %145 : vector<8x8xf32>
    %cst_69 = arith.constant dense<0.000000e+00> : vector<8x8xf32>
    %147 = tpu.matmul %7, %146, %cst_69 {dimension_numbers = #tpu.dot_dimension_numbers<[1], [0], [0], [1], [0, 0, 1, 1], [], []>} : vector<8x8xf32>, vector<8x8xf32>, vector<8x8xf32> -> vector<8x8xf32>
    %148 = arith.mulf %140, %147 : vector<8x8xf32>
    %cst_70 = arith.constant -1.000000e+30 : f32
    %149 = vector.broadcast %cst_70 : f32 to vector<8x8xf32>
    %150 = arith.select %135, %148, %149 : vector<8x8xi1>, vector<8x8xf32>
    %cst_71 = arith.constant dense<0xFF800000> : vector<8xf32>
    %151 = vector.multi_reduction <maximumf>, %150, %cst_71 [1] : vector<8x8xf32> to vector<8xf32>
    %152 = vector.shape_cast %151 : vector<8xf32> to vector<8x1xf32>
    %c64 = arith.constant 64 : index
    %c0_72 = arith.constant 0 : index
    %153 = vector.load %arg2[%c64, %c0_72] : memref<128x128xf32, #tpu.memory_space<vmem>>, vector<32x128xf32>
    %154 = vector.extract_strided_slice %153 {offsets = [0, 0], sizes = [32, 32], strides = [1, 1]} : vector<32x128xf32> to vector<32x32xf32>
    %cst_73 = arith.constant dense<0.000000e+00> : vector<8x32xf32>
    %155 = tpu.matmul %101, %154, %cst_73 {dimension_numbers = #tpu.dot_dimension_numbers<[1], [0], [0], [1], [0, 0, 1, 1], [], []>} : vector<8x32xf32>, vector<32x32xf32>, vector<8x32xf32> -> vector<8x32xf32>
    %c96 = arith.constant 96 : index
    %c0_74 = arith.constant 0 : index
    %156 = vector.load %arg2[%c96, %c0_74] : memref<128x128xf32, #tpu.memory_space<vmem>>, vector<1x128xf32>
    %157 = vector.extract_strided_slice %156 {offsets = [0, 0], sizes = [1, 32], strides = [1, 1]} : vector<1x128xf32> to vector<1x32xf32>
    %cst_75 = arith.constant dense<0.000000e+00> : vector<8x32xf32>
    %158 = tpu.matmul %144, %157, %cst_75 {dimension_numbers = #tpu.dot_dimension_numbers<[1], [0], [0], [1], [0, 0, 1, 1], [], []>} : vector<8x1xf32>, vector<1x32xf32>, vector<8x32xf32> -> vector<8x32xf32>
    %159 = arith.addf %155, %158 : vector<8x32xf32>
    %c96_76 = arith.constant 96 : index
    %c0_77 = arith.constant 0 : index
    %160 = vector.load %arg2[%c96_76, %c0_77] : memref<128x128xf32, #tpu.memory_space<vmem>>, vector<1x128xf32>
    %161 = vector.extract_strided_slice %160 {offsets = [0, 32], sizes = [1, 32], strides = [1, 1]} : vector<1x128xf32> to vector<1x32xf32>
    %cst_78 = arith.constant dense<0.000000e+00> : vector<8x32xf32>
    %162 = tpu.matmul %152, %161, %cst_78 {dimension_numbers = #tpu.dot_dimension_numbers<[1], [0], [0], [1], [0, 0, 1, 1], [], []>} : vector<8x1xf32>, vector<1x32xf32>, vector<8x32xf32> -> vector<8x32xf32>
    %163 = arith.addf %159, %162 : vector<8x32xf32>
    %c96_79 = arith.constant 96 : index
    %c0_80 = arith.constant 0 : index
    %164 = vector.load %arg2[%c96_79, %c0_80] : memref<128x128xf32, #tpu.memory_space<vmem>>, vector<1x128xf32>
    %165 = vector.extract_strided_slice %164 {offsets = [0, 64], sizes = [1, 32], strides = [1, 1]} : vector<1x128xf32> to vector<1x32xf32>
    %166 = vector.broadcast %165 : vector<1x32xf32> to vector<8x32xf32>
    %167 = arith.addf %163, %166 : vector<8x32xf32>
    %c64_81 = arith.constant 64 : index
    %c0_82 = arith.constant 0 : index
    %168 = vector.load %arg2[%c64_81, %c0_82] : memref<128x128xf32, #tpu.memory_space<vmem>>, vector<32x128xf32>
    %169 = vector.extract_strided_slice %168 {offsets = [0, 32], sizes = [32, 4], strides = [1, 1]} : vector<32x128xf32> to vector<32x4xf32>
    %cst_83 = arith.constant dense<0.000000e+00> : vector<8x4xf32>
    %170 = tpu.matmul %167, %169, %cst_83 {dimension_numbers = #tpu.dot_dimension_numbers<[1], [0], [0], [1], [0, 0, 1, 1], [], []>} : vector<8x32xf32>, vector<32x4xf32>, vector<8x4xf32> -> vector<8x4xf32>
    %c96_84 = arith.constant 96 : index
    %c0_85 = arith.constant 0 : index
    %171 = vector.load %arg2[%c96_84, %c0_85] : memref<128x128xf32, #tpu.memory_space<vmem>>, vector<1x128xf32>
    %172 = vector.extract_strided_slice %171 {offsets = [0, 96], sizes = [1, 4], strides = [1, 1]} : vector<1x128xf32> to vector<1x4xf32>
    %173 = vector.broadcast %172 : vector<1x4xf32> to vector<8x4xf32>
    %174 = arith.addf %170, %173 : vector<8x4xf32>
    %175 = vector.extract_strided_slice %174 {offsets = [0, 0], sizes = [8, 3], strides = [1, 1]} : vector<8x4xf32> to vector<8x3xf32>
    %176 = vector.extract_strided_slice %174 {offsets = [0, 3], sizes = [8, 1], strides = [1, 1]} : vector<8x4xf32> to vector<8x1xf32>
    %cst_86 = arith.constant dense<0.000000e+00> : vector<8x8xf32>
    %177 = tpu.matmul %175, %175, %cst_86 {dimension_numbers = #tpu.dot_dimension_numbers<[1], [1], [0], [0], [0, 0, 1, 0], [], []>} : vector<8x3xf32>, vector<8x3xf32>, vector<8x8xf32> -> vector<8x8xf32>
    %178 = arith.mulf %175, %175 : vector<8x3xf32>
    %cst_87 = arith.constant dense<0.000000e+00> : vector<8x8xf32>
    %179 = tpu.matmul %178, %10, %cst_87 {dimension_numbers = #tpu.dot_dimension_numbers<[1], [0], [0], [1], [0, 0, 1, 1], [], []>} : vector<8x3xf32>, vector<3x8xf32>, vector<8x8xf32> -> vector<8x8xf32>
    %180 = arith.mulf %6, %179 : vector<8x8xf32>
    %cst_88 = arith.constant dense<0.000000e+00> : vector<8x8xf32>
    %181 = tpu.matmul %7, %180, %cst_88 {dimension_numbers = #tpu.dot_dimension_numbers<[1], [0], [0], [1], [0, 0, 1, 1], [], []>} : vector<8x8xf32>, vector<8x8xf32>, vector<8x8xf32> -> vector<8x8xf32>
    %182 = arith.addf %179, %181 : vector<8x8xf32>
    %cst_89 = arith.constant 2.000000e+00 : f32
    %183 = vector.broadcast %cst_89 : f32 to vector<8x8xf32>
    %184 = arith.mulf %183, %177 : vector<8x8xf32>
    %185 = arith.subf %182, %184 : vector<8x8xf32>
    %cst_90 = arith.constant 0.000000e+00 : f32
    %186 = vector.broadcast %cst_90 : f32 to vector<8x8xf32>
    %187 = arith.maximumf %185, %186 : vector<8x8xf32>
    %cst_91 = arith.constant 1.000000e+30 : f32
    %188 = vector.broadcast %cst_91 : f32 to vector<8x8xf32>
    %189 = arith.select %4, %188, %187 : vector<8x8xi1>, vector<8x8xf32>
    %cst_92 = arith.constant dense<0x7F800000> : vector<8xf32>
    %190 = vector.multi_reduction <minimumf>, %189, %cst_92 [1] : vector<8x8xf32> to vector<8xf32>
    %191 = vector.shape_cast %190 : vector<8xf32> to vector<8x1xf32>
    %192 = vector.broadcast %191 : vector<8x1xf32> to vector<8x8xf32>
    %193 = arith.cmpf ole, %189, %192 : vector<8x8xf32>
    %194 = arith.ori %4, %193 : vector<8x8xi1>
    %cst_93 = arith.constant 1.000000e+30 : f32
    %195 = vector.broadcast %cst_93 : f32 to vector<8x8xf32>
    %196 = arith.select %193, %195, %189 : vector<8x8xi1>, vector<8x8xf32>
    %cst_94 = arith.constant dense<0x7F800000> : vector<8xf32>
    %197 = vector.multi_reduction <minimumf>, %196, %cst_94 [1] : vector<8x8xf32> to vector<8xf32>
    %198 = vector.shape_cast %197 : vector<8xf32> to vector<8x1xf32>
    %199 = vector.broadcast %198 : vector<8x1xf32> to vector<8x8xf32>
    %200 = arith.cmpf ole, %196, %199 : vector<8x8xf32>
    %201 = arith.ori %194, %200 : vector<8x8xi1>
    %202 = arith.extui %201 : vector<8x8xi1> to vector<8x8xi32>
    %203 = arith.sitofp %202 : vector<8x8xi32> to vector<8x8xf32>
    %cst_95 = arith.constant -1.000000e+01 : f32
    %204 = vector.broadcast %cst_95 : f32 to vector<8x8xf32>
    %205 = arith.mulf %204, %187 : vector<8x8xf32>
    %206 = math.exp %205 : vector<8x8xf32>
    %cst_96 = arith.constant dense<0.000000e+00> : vector<8x1xf32>
    %207 = tpu.matmul %203, %8, %cst_96 {dimension_numbers = #tpu.dot_dimension_numbers<[1], [0], [0], [1], [0, 0, 1, 1], [], []>} : vector<8x8xf32>, vector<8x1xf32>, vector<8x1xf32> -> vector<8x1xf32>
    %208 = arith.mulf %206, %203 : vector<8x8xf32>
    %cst_97 = arith.constant dense<0.000000e+00> : vector<8x1xf32>
    %209 = tpu.matmul %208, %176, %cst_97 {dimension_numbers = #tpu.dot_dimension_numbers<[1], [0], [0], [1], [0, 0, 1, 1], [], []>} : vector<8x8xf32>, vector<8x1xf32>, vector<8x1xf32> -> vector<8x1xf32>
    %210 = arith.divf %209, %207 : vector<8x1xf32>
    %cst_98 = arith.constant dense<0.000000e+00> : vector<8x8xf32>
    %211 = tpu.matmul %176, %9, %cst_98 {dimension_numbers = #tpu.dot_dimension_numbers<[1], [0], [0], [1], [0, 0, 1, 1], [], []>} : vector<8x1xf32>, vector<1x8xf32>, vector<8x8xf32> -> vector<8x8xf32>
    %212 = arith.mulf %6, %211 : vector<8x8xf32>
    %cst_99 = arith.constant dense<0.000000e+00> : vector<8x8xf32>
    %213 = tpu.matmul %7, %212, %cst_99 {dimension_numbers = #tpu.dot_dimension_numbers<[1], [0], [0], [1], [0, 0, 1, 1], [], []>} : vector<8x8xf32>, vector<8x8xf32>, vector<8x8xf32> -> vector<8x8xf32>
    %214 = arith.mulf %206, %213 : vector<8x8xf32>
    %cst_100 = arith.constant -1.000000e+30 : f32
    %215 = vector.broadcast %cst_100 : f32 to vector<8x8xf32>
    %216 = arith.select %201, %214, %215 : vector<8x8xi1>, vector<8x8xf32>
    %cst_101 = arith.constant dense<0xFF800000> : vector<8xf32>
    %217 = vector.multi_reduction <maximumf>, %216, %cst_101 [1] : vector<8x8xf32> to vector<8xf32>
    %218 = vector.shape_cast %217 : vector<8xf32> to vector<8x1xf32>
    %c64_102 = arith.constant 64 : index
    %c0_103 = arith.constant 0 : index
    %219 = vector.load %arg2[%c64_102, %c0_103] : memref<128x128xf32, #tpu.memory_space<vmem>>, vector<32x128xf32>
    %220 = vector.extract_strided_slice %219 {offsets = [0, 36], sizes = [32, 16], strides = [1, 1]} : vector<32x128xf32> to vector<32x16xf32>
    %cst_104 = arith.constant dense<0.000000e+00> : vector<8x16xf32>
    %221 = tpu.matmul %167, %220, %cst_104 {dimension_numbers = #tpu.dot_dimension_numbers<[1], [0], [0], [1], [0, 0, 1, 1], [], []>} : vector<8x32xf32>, vector<32x16xf32>, vector<8x16xf32> -> vector<8x16xf32>
    %c96_105 = arith.constant 96 : index
    %c0_106 = arith.constant 0 : index
    %222 = vector.load %arg2[%c96_105, %c0_106] : memref<128x128xf32, #tpu.memory_space<vmem>>, vector<1x128xf32>
    %223 = vector.extract_strided_slice %222 {offsets = [0, 100], sizes = [1, 16], strides = [1, 1]} : vector<1x128xf32> to vector<1x16xf32>
    %cst_107 = arith.constant dense<0.000000e+00> : vector<8x16xf32>
    %224 = tpu.matmul %210, %223, %cst_107 {dimension_numbers = #tpu.dot_dimension_numbers<[1], [0], [0], [1], [0, 0, 1, 1], [], []>} : vector<8x1xf32>, vector<1x16xf32>, vector<8x16xf32> -> vector<8x16xf32>
    %225 = arith.addf %221, %224 : vector<8x16xf32>
    %c104 = arith.constant 104 : index
    %c0_108 = arith.constant 0 : index
    %226 = vector.load %arg2[%c104, %c0_108] : memref<128x128xf32, #tpu.memory_space<vmem>>, vector<1x128xf32>
    %227 = vector.extract_strided_slice %226 {offsets = [0, 0], sizes = [1, 16], strides = [1, 1]} : vector<1x128xf32> to vector<1x16xf32>
    %cst_109 = arith.constant dense<0.000000e+00> : vector<8x16xf32>
    %228 = tpu.matmul %218, %227, %cst_109 {dimension_numbers = #tpu.dot_dimension_numbers<[1], [0], [0], [1], [0, 0, 1, 1], [], []>} : vector<8x1xf32>, vector<1x16xf32>, vector<8x16xf32> -> vector<8x16xf32>
    %229 = arith.addf %225, %228 : vector<8x16xf32>
    %c104_110 = arith.constant 104 : index
    %c0_111 = arith.constant 0 : index
    %230 = vector.load %arg2[%c104_110, %c0_111] : memref<128x128xf32, #tpu.memory_space<vmem>>, vector<1x128xf32>
    %231 = vector.extract_strided_slice %230 {offsets = [0, 16], sizes = [1, 16], strides = [1, 1]} : vector<1x128xf32> to vector<1x16xf32>
    %232 = vector.broadcast %231 : vector<1x16xf32> to vector<8x16xf32>
    %233 = arith.addf %229, %232 : vector<8x16xf32>
    %c0_112 = arith.constant 0 : index
    %c0_113 = arith.constant 0 : index
    %234 = vector.load %arg2[%c0_112, %c0_113] : memref<128x128xf32, #tpu.memory_space<vmem>>, vector<16x128xf32>
    %235 = vector.extract_strided_slice %234 {offsets = [0, 32], sizes = [16, 4], strides = [1, 1]} : vector<16x128xf32> to vector<16x4xf32>
    %cst_114 = arith.constant dense<0.000000e+00> : vector<8x4xf32>
    %236 = tpu.matmul %233, %235, %cst_114 {dimension_numbers = #tpu.dot_dimension_numbers<[1], [0], [0], [1], [0, 0, 1, 1], [], []>} : vector<8x16xf32>, vector<16x4xf32>, vector<8x4xf32> -> vector<8x4xf32>
    %c104_115 = arith.constant 104 : index
    %c0_116 = arith.constant 0 : index
    %237 = vector.load %arg2[%c104_115, %c0_116] : memref<128x128xf32, #tpu.memory_space<vmem>>, vector<1x128xf32>
    %238 = vector.extract_strided_slice %237 {offsets = [0, 32], sizes = [1, 4], strides = [1, 1]} : vector<1x128xf32> to vector<1x4xf32>
    %239 = vector.broadcast %238 : vector<1x4xf32> to vector<8x4xf32>
    %240 = arith.addf %236, %239 : vector<8x4xf32>
    %241 = vector.extract_strided_slice %240 {offsets = [0, 0], sizes = [8, 3], strides = [1, 1]} : vector<8x4xf32> to vector<8x3xf32>
    %242 = vector.extract_strided_slice %240 {offsets = [0, 3], sizes = [8, 1], strides = [1, 1]} : vector<8x4xf32> to vector<8x1xf32>
    %cst_117 = arith.constant dense<0.000000e+00> : vector<8x8xf32>
    %243 = tpu.matmul %241, %241, %cst_117 {dimension_numbers = #tpu.dot_dimension_numbers<[1], [1], [0], [0], [0, 0, 1, 0], [], []>} : vector<8x3xf32>, vector<8x3xf32>, vector<8x8xf32> -> vector<8x8xf32>
    %244 = arith.mulf %241, %241 : vector<8x3xf32>
    %cst_118 = arith.constant dense<0.000000e+00> : vector<8x8xf32>
    %245 = tpu.matmul %244, %10, %cst_118 {dimension_numbers = #tpu.dot_dimension_numbers<[1], [0], [0], [1], [0, 0, 1, 1], [], []>} : vector<8x3xf32>, vector<3x8xf32>, vector<8x8xf32> -> vector<8x8xf32>
    %246 = arith.mulf %6, %245 : vector<8x8xf32>
    %cst_119 = arith.constant dense<0.000000e+00> : vector<8x8xf32>
    %247 = tpu.matmul %7, %246, %cst_119 {dimension_numbers = #tpu.dot_dimension_numbers<[1], [0], [0], [1], [0, 0, 1, 1], [], []>} : vector<8x8xf32>, vector<8x8xf32>, vector<8x8xf32> -> vector<8x8xf32>
    %248 = arith.addf %245, %247 : vector<8x8xf32>
    %cst_120 = arith.constant 2.000000e+00 : f32
    %249 = vector.broadcast %cst_120 : f32 to vector<8x8xf32>
    %250 = arith.mulf %249, %243 : vector<8x8xf32>
    %251 = arith.subf %248, %250 : vector<8x8xf32>
    %cst_121 = arith.constant 0.000000e+00 : f32
    %252 = vector.broadcast %cst_121 : f32 to vector<8x8xf32>
    %253 = arith.maximumf %251, %252 : vector<8x8xf32>
    %cst_122 = arith.constant 1.000000e+30 : f32
    %254 = vector.broadcast %cst_122 : f32 to vector<8x8xf32>
    %255 = arith.select %4, %254, %253 : vector<8x8xi1>, vector<8x8xf32>
    %cst_123 = arith.constant dense<0x7F800000> : vector<8xf32>
    %256 = vector.multi_reduction <minimumf>, %255, %cst_123 [1] : vector<8x8xf32> to vector<8xf32>
    %257 = vector.shape_cast %256 : vector<8xf32> to vector<8x1xf32>
    %258 = vector.broadcast %257 : vector<8x1xf32> to vector<8x8xf32>
    %259 = arith.cmpf ole, %255, %258 : vector<8x8xf32>
    %260 = arith.ori %4, %259 : vector<8x8xi1>
    %cst_124 = arith.constant 1.000000e+30 : f32
    %261 = vector.broadcast %cst_124 : f32 to vector<8x8xf32>
    %262 = arith.select %259, %261, %255 : vector<8x8xi1>, vector<8x8xf32>
    %cst_125 = arith.constant dense<0x7F800000> : vector<8xf32>
    %263 = vector.multi_reduction <minimumf>, %262, %cst_125 [1] : vector<8x8xf32> to vector<8xf32>
    %264 = vector.shape_cast %263 : vector<8xf32> to vector<8x1xf32>
    %265 = vector.broadcast %264 : vector<8x1xf32> to vector<8x8xf32>
    %266 = arith.cmpf ole, %262, %265 : vector<8x8xf32>
    %267 = arith.ori %260, %266 : vector<8x8xi1>
    %268 = arith.extui %267 : vector<8x8xi1> to vector<8x8xi32>
    %269 = arith.sitofp %268 : vector<8x8xi32> to vector<8x8xf32>
    %cst_126 = arith.constant -1.000000e+01 : f32
    %270 = vector.broadcast %cst_126 : f32 to vector<8x8xf32>
    %271 = arith.mulf %270, %253 : vector<8x8xf32>
    %272 = math.exp %271 : vector<8x8xf32>
    %cst_127 = arith.constant dense<0.000000e+00> : vector<8x1xf32>
    %273 = tpu.matmul %269, %8, %cst_127 {dimension_numbers = #tpu.dot_dimension_numbers<[1], [0], [0], [1], [0, 0, 1, 1], [], []>} : vector<8x8xf32>, vector<8x1xf32>, vector<8x1xf32> -> vector<8x1xf32>
    %274 = arith.mulf %272, %269 : vector<8x8xf32>
    %cst_128 = arith.constant dense<0.000000e+00> : vector<8x1xf32>
    %275 = tpu.matmul %274, %242, %cst_128 {dimension_numbers = #tpu.dot_dimension_numbers<[1], [0], [0], [1], [0, 0, 1, 1], [], []>} : vector<8x8xf32>, vector<8x1xf32>, vector<8x1xf32> -> vector<8x1xf32>
    %276 = arith.divf %275, %273 : vector<8x1xf32>
    %cst_129 = arith.constant dense<0.000000e+00> : vector<8x8xf32>
    %277 = tpu.matmul %242, %9, %cst_129 {dimension_numbers = #tpu.dot_dimension_numbers<[1], [0], [0], [1], [0, 0, 1, 1], [], []>} : vector<8x1xf32>, vector<1x8xf32>, vector<8x8xf32> -> vector<8x8xf32>
    %278 = arith.mulf %6, %277 : vector<8x8xf32>
    %cst_130 = arith.constant dense<0.000000e+00> : vector<8x8xf32>
    %279 = tpu.matmul %7, %278, %cst_130 {dimension_numbers = #tpu.dot_dimension_numbers<[1], [0], [0], [1], [0, 0, 1, 1], [], []>} : vector<8x8xf32>, vector<8x8xf32>, vector<8x8xf32> -> vector<8x8xf32>
    %280 = arith.mulf %272, %279 : vector<8x8xf32>
    %cst_131 = arith.constant -1.000000e+30 : f32
    %281 = vector.broadcast %cst_131 : f32 to vector<8x8xf32>
    %282 = arith.select %267, %280, %281 : vector<8x8xi1>, vector<8x8xf32>
    %cst_132 = arith.constant dense<0xFF800000> : vector<8xf32>
    %283 = vector.multi_reduction <maximumf>, %282, %cst_132 [1] : vector<8x8xf32> to vector<8xf32>
    %284 = vector.shape_cast %283 : vector<8xf32> to vector<8x1xf32>
    %c0_133 = arith.constant 0 : index
    %c0_134 = arith.constant 0 : index
    %285 = vector.load %arg2[%c0_133, %c0_134] : memref<128x128xf32, #tpu.memory_space<vmem>>, vector<16x128xf32>
    %286 = vector.extract_strided_slice %285 {offsets = [0, 36], sizes = [16, 16], strides = [1, 1]} : vector<16x128xf32> to vector<16x16xf32>
    %cst_135 = arith.constant dense<0.000000e+00> : vector<8x16xf32>
    %287 = tpu.matmul %233, %286, %cst_135 {dimension_numbers = #tpu.dot_dimension_numbers<[1], [0], [0], [1], [0, 0, 1, 1], [], []>} : vector<8x16xf32>, vector<16x16xf32>, vector<8x16xf32> -> vector<8x16xf32>
    %c104_136 = arith.constant 104 : index
    %c0_137 = arith.constant 0 : index
    %288 = vector.load %arg2[%c104_136, %c0_137] : memref<128x128xf32, #tpu.memory_space<vmem>>, vector<1x128xf32>
    %289 = vector.extract_strided_slice %288 {offsets = [0, 36], sizes = [1, 16], strides = [1, 1]} : vector<1x128xf32> to vector<1x16xf32>
    %cst_138 = arith.constant dense<0.000000e+00> : vector<8x16xf32>
    %290 = tpu.matmul %276, %289, %cst_138 {dimension_numbers = #tpu.dot_dimension_numbers<[1], [0], [0], [1], [0, 0, 1, 1], [], []>} : vector<8x1xf32>, vector<1x16xf32>, vector<8x16xf32> -> vector<8x16xf32>
    %291 = arith.addf %287, %290 : vector<8x16xf32>
    %c104_139 = arith.constant 104 : index
    %c0_140 = arith.constant 0 : index
    %292 = vector.load %arg2[%c104_139, %c0_140] : memref<128x128xf32, #tpu.memory_space<vmem>>, vector<1x128xf32>
    %293 = vector.extract_strided_slice %292 {offsets = [0, 52], sizes = [1, 16], strides = [1, 1]} : vector<1x128xf32> to vector<1x16xf32>
    %cst_141 = arith.constant dense<0.000000e+00> : vector<8x16xf32>
    %294 = tpu.matmul %284, %293, %cst_141 {dimension_numbers = #tpu.dot_dimension_numbers<[1], [0], [0], [1], [0, 0, 1, 1], [], []>} : vector<8x1xf32>, vector<1x16xf32>, vector<8x16xf32> -> vector<8x16xf32>
    %295 = arith.addf %291, %294 : vector<8x16xf32>
    %c104_142 = arith.constant 104 : index
    %c0_143 = arith.constant 0 : index
    %296 = vector.load %arg2[%c104_142, %c0_143] : memref<128x128xf32, #tpu.memory_space<vmem>>, vector<1x128xf32>
    %297 = vector.extract_strided_slice %296 {offsets = [0, 68], sizes = [1, 16], strides = [1, 1]} : vector<1x128xf32> to vector<1x16xf32>
    %298 = vector.broadcast %297 : vector<1x16xf32> to vector<8x16xf32>
    %299 = arith.addf %295, %298 : vector<8x16xf32>
    %c0_144 = arith.constant 0 : index
    %c0_145 = arith.constant 0 : index
    %300 = vector.load %arg2[%c0_144, %c0_145] : memref<128x128xf32, #tpu.memory_space<vmem>>, vector<16x128xf32>
    %301 = vector.extract_strided_slice %300 {offsets = [0, 52], sizes = [16, 4], strides = [1, 1]} : vector<16x128xf32> to vector<16x4xf32>
    %cst_146 = arith.constant dense<0.000000e+00> : vector<8x4xf32>
    %302 = tpu.matmul %299, %301, %cst_146 {dimension_numbers = #tpu.dot_dimension_numbers<[1], [0], [0], [1], [0, 0, 1, 1], [], []>} : vector<8x16xf32>, vector<16x4xf32>, vector<8x4xf32> -> vector<8x4xf32>
    %c104_147 = arith.constant 104 : index
    %c0_148 = arith.constant 0 : index
    %303 = vector.load %arg2[%c104_147, %c0_148] : memref<128x128xf32, #tpu.memory_space<vmem>>, vector<1x128xf32>
    %304 = vector.extract_strided_slice %303 {offsets = [0, 84], sizes = [1, 4], strides = [1, 1]} : vector<1x128xf32> to vector<1x4xf32>
    %305 = vector.broadcast %304 : vector<1x4xf32> to vector<8x4xf32>
    %306 = arith.addf %302, %305 : vector<8x4xf32>
    %307 = vector.extract_strided_slice %306 {offsets = [0, 0], sizes = [8, 3], strides = [1, 1]} : vector<8x4xf32> to vector<8x3xf32>
    %308 = vector.extract_strided_slice %306 {offsets = [0, 3], sizes = [8, 1], strides = [1, 1]} : vector<8x4xf32> to vector<8x1xf32>
    %cst_149 = arith.constant dense<0.000000e+00> : vector<8x8xf32>
    %309 = tpu.matmul %307, %307, %cst_149 {dimension_numbers = #tpu.dot_dimension_numbers<[1], [1], [0], [0], [0, 0, 1, 0], [], []>} : vector<8x3xf32>, vector<8x3xf32>, vector<8x8xf32> -> vector<8x8xf32>
    %310 = arith.mulf %307, %307 : vector<8x3xf32>
    %cst_150 = arith.constant dense<0.000000e+00> : vector<8x8xf32>
    %311 = tpu.matmul %310, %10, %cst_150 {dimension_numbers = #tpu.dot_dimension_numbers<[1], [0], [0], [1], [0, 0, 1, 1], [], []>} : vector<8x3xf32>, vector<3x8xf32>, vector<8x8xf32> -> vector<8x8xf32>
    %312 = arith.mulf %6, %311 : vector<8x8xf32>
    %cst_151 = arith.constant dense<0.000000e+00> : vector<8x8xf32>
    %313 = tpu.matmul %7, %312, %cst_151 {dimension_numbers = #tpu.dot_dimension_numbers<[1], [0], [0], [1], [0, 0, 1, 1], [], []>} : vector<8x8xf32>, vector<8x8xf32>, vector<8x8xf32> -> vector<8x8xf32>
    %314 = arith.addf %311, %313 : vector<8x8xf32>
    %cst_152 = arith.constant 2.000000e+00 : f32
    %315 = vector.broadcast %cst_152 : f32 to vector<8x8xf32>
    %316 = arith.mulf %315, %309 : vector<8x8xf32>
    %317 = arith.subf %314, %316 : vector<8x8xf32>
    %cst_153 = arith.constant 0.000000e+00 : f32
    %318 = vector.broadcast %cst_153 : f32 to vector<8x8xf32>
    %319 = arith.maximumf %317, %318 : vector<8x8xf32>
    %cst_154 = arith.constant 1.000000e+30 : f32
    %320 = vector.broadcast %cst_154 : f32 to vector<8x8xf32>
    %321 = arith.select %4, %320, %319 : vector<8x8xi1>, vector<8x8xf32>
    %cst_155 = arith.constant dense<0x7F800000> : vector<8xf32>
    %322 = vector.multi_reduction <minimumf>, %321, %cst_155 [1] : vector<8x8xf32> to vector<8xf32>
    %323 = vector.shape_cast %322 : vector<8xf32> to vector<8x1xf32>
    %324 = vector.broadcast %323 : vector<8x1xf32> to vector<8x8xf32>
    %325 = arith.cmpf ole, %321, %324 : vector<8x8xf32>
    %326 = arith.ori %4, %325 : vector<8x8xi1>
    %cst_156 = arith.constant 1.000000e+30 : f32
    %327 = vector.broadcast %cst_156 : f32 to vector<8x8xf32>
    %328 = arith.select %325, %327, %321 : vector<8x8xi1>, vector<8x8xf32>
    %cst_157 = arith.constant dense<0x7F800000> : vector<8xf32>
    %329 = vector.multi_reduction <minimumf>, %328, %cst_157 [1] : vector<8x8xf32> to vector<8xf32>
    %330 = vector.shape_cast %329 : vector<8xf32> to vector<8x1xf32>
    %331 = vector.broadcast %330 : vector<8x1xf32> to vector<8x8xf32>
    %332 = arith.cmpf ole, %328, %331 : vector<8x8xf32>
    %333 = arith.ori %326, %332 : vector<8x8xi1>
    %334 = arith.extui %333 : vector<8x8xi1> to vector<8x8xi32>
    %335 = arith.sitofp %334 : vector<8x8xi32> to vector<8x8xf32>
    %cst_158 = arith.constant -1.000000e+01 : f32
    %336 = vector.broadcast %cst_158 : f32 to vector<8x8xf32>
    %337 = arith.mulf %336, %319 : vector<8x8xf32>
    %338 = math.exp %337 : vector<8x8xf32>
    %cst_159 = arith.constant dense<0.000000e+00> : vector<8x1xf32>
    %339 = tpu.matmul %335, %8, %cst_159 {dimension_numbers = #tpu.dot_dimension_numbers<[1], [0], [0], [1], [0, 0, 1, 1], [], []>} : vector<8x8xf32>, vector<8x1xf32>, vector<8x1xf32> -> vector<8x1xf32>
    %340 = arith.mulf %338, %335 : vector<8x8xf32>
    %cst_160 = arith.constant dense<0.000000e+00> : vector<8x1xf32>
    %341 = tpu.matmul %340, %308, %cst_160 {dimension_numbers = #tpu.dot_dimension_numbers<[1], [0], [0], [1], [0, 0, 1, 1], [], []>} : vector<8x8xf32>, vector<8x1xf32>, vector<8x1xf32> -> vector<8x1xf32>
    %342 = arith.divf %341, %339 : vector<8x1xf32>
    %cst_161 = arith.constant dense<0.000000e+00> : vector<8x8xf32>
    %343 = tpu.matmul %308, %9, %cst_161 {dimension_numbers = #tpu.dot_dimension_numbers<[1], [0], [0], [1], [0, 0, 1, 1], [], []>} : vector<8x1xf32>, vector<1x8xf32>, vector<8x8xf32> -> vector<8x8xf32>
    %344 = arith.mulf %6, %343 : vector<8x8xf32>
    %cst_162 = arith.constant dense<0.000000e+00> : vector<8x8xf32>
    %345 = tpu.matmul %7, %344, %cst_162 {dimension_numbers = #tpu.dot_dimension_numbers<[1], [0], [0], [1], [0, 0, 1, 1], [], []>} : vector<8x8xf32>, vector<8x8xf32>, vector<8x8xf32> -> vector<8x8xf32>
    %346 = arith.mulf %338, %345 : vector<8x8xf32>
    %cst_163 = arith.constant -1.000000e+30 : f32
    %347 = vector.broadcast %cst_163 : f32 to vector<8x8xf32>
    %348 = arith.select %333, %346, %347 : vector<8x8xi1>, vector<8x8xf32>
    %cst_164 = arith.constant dense<0xFF800000> : vector<8xf32>
    %349 = vector.multi_reduction <maximumf>, %348, %cst_164 [1] : vector<8x8xf32> to vector<8xf32>
    %350 = vector.shape_cast %349 : vector<8xf32> to vector<8x1xf32>
    %c0_165 = arith.constant 0 : index
    %c0_166 = arith.constant 0 : index
    %351 = vector.load %arg2[%c0_165, %c0_166] : memref<128x128xf32, #tpu.memory_space<vmem>>, vector<16x128xf32>
    %352 = vector.extract_strided_slice %351 {offsets = [0, 56], sizes = [16, 8], strides = [1, 1]} : vector<16x128xf32> to vector<16x8xf32>
    %cst_167 = arith.constant dense<0.000000e+00> : vector<8x8xf32>
    %353 = tpu.matmul %299, %352, %cst_167 {dimension_numbers = #tpu.dot_dimension_numbers<[1], [0], [0], [1], [0, 0, 1, 1], [], []>} : vector<8x16xf32>, vector<16x8xf32>, vector<8x8xf32> -> vector<8x8xf32>
    %c104_168 = arith.constant 104 : index
    %c0_169 = arith.constant 0 : index
    %354 = vector.load %arg2[%c104_168, %c0_169] : memref<128x128xf32, #tpu.memory_space<vmem>>, vector<1x128xf32>
    %355 = vector.extract_strided_slice %354 {offsets = [0, 88], sizes = [1, 8], strides = [1, 1]} : vector<1x128xf32> to vector<1x8xf32>
    %cst_170 = arith.constant dense<0.000000e+00> : vector<8x8xf32>
    %356 = tpu.matmul %342, %355, %cst_170 {dimension_numbers = #tpu.dot_dimension_numbers<[1], [0], [0], [1], [0, 0, 1, 1], [], []>} : vector<8x1xf32>, vector<1x8xf32>, vector<8x8xf32> -> vector<8x8xf32>
    %357 = arith.addf %353, %356 : vector<8x8xf32>
    %c104_171 = arith.constant 104 : index
    %c0_172 = arith.constant 0 : index
    %358 = vector.load %arg2[%c104_171, %c0_172] : memref<128x128xf32, #tpu.memory_space<vmem>>, vector<1x128xf32>
    %359 = vector.extract_strided_slice %358 {offsets = [0, 96], sizes = [1, 8], strides = [1, 1]} : vector<1x128xf32> to vector<1x8xf32>
    %cst_173 = arith.constant dense<0.000000e+00> : vector<8x8xf32>
    %360 = tpu.matmul %350, %359, %cst_173 {dimension_numbers = #tpu.dot_dimension_numbers<[1], [0], [0], [1], [0, 0, 1, 1], [], []>} : vector<8x1xf32>, vector<1x8xf32>, vector<8x8xf32> -> vector<8x8xf32>
    %361 = arith.addf %357, %360 : vector<8x8xf32>
    %c104_174 = arith.constant 104 : index
    %c0_175 = arith.constant 0 : index
    %362 = vector.load %arg2[%c104_174, %c0_175] : memref<128x128xf32, #tpu.memory_space<vmem>>, vector<1x128xf32>
    %363 = vector.extract_strided_slice %362 {offsets = [0, 104], sizes = [1, 8], strides = [1, 1]} : vector<1x128xf32> to vector<1x8xf32>
    %364 = vector.broadcast %363 : vector<1x8xf32> to vector<8x8xf32>
    %365 = arith.addf %361, %364 : vector<8x8xf32>
    %c104_176 = arith.constant 104 : index
    %c0_177 = arith.constant 0 : index
    %366 = vector.load %arg2[%c104_176, %c0_177] : memref<128x128xf32, #tpu.memory_space<vmem>>, vector<8x128xf32>
    %367 = vector.extract_strided_slice %366 {offsets = [0, 112], sizes = [8, 4], strides = [1, 1]} : vector<8x128xf32> to vector<8x4xf32>
    %cst_178 = arith.constant dense<0.000000e+00> : vector<8x4xf32>
    %368 = tpu.matmul %365, %367, %cst_178 {dimension_numbers = #tpu.dot_dimension_numbers<[1], [0], [0], [1], [0, 0, 1, 1], [], []>} : vector<8x8xf32>, vector<8x4xf32>, vector<8x4xf32> -> vector<8x4xf32>
    %c104_179 = arith.constant 104 : index
    %c0_180 = arith.constant 0 : index
    %369 = vector.load %arg2[%c104_179, %c0_180] : memref<128x128xf32, #tpu.memory_space<vmem>>, vector<1x128xf32>
    %370 = vector.extract_strided_slice %369 {offsets = [0, 116], sizes = [1, 4], strides = [1, 1]} : vector<1x128xf32> to vector<1x4xf32>
    %371 = vector.broadcast %370 : vector<1x4xf32> to vector<8x4xf32>
    %372 = arith.addf %368, %371 : vector<8x4xf32>
    %373 = vector.extract_strided_slice %372 {offsets = [0, 0], sizes = [8, 3], strides = [1, 1]} : vector<8x4xf32> to vector<8x3xf32>
    %374 = vector.extract_strided_slice %372 {offsets = [0, 3], sizes = [8, 1], strides = [1, 1]} : vector<8x4xf32> to vector<8x1xf32>
    %cst_181 = arith.constant dense<0.000000e+00> : vector<8x8xf32>
    %375 = tpu.matmul %373, %373, %cst_181 {dimension_numbers = #tpu.dot_dimension_numbers<[1], [1], [0], [0], [0, 0, 1, 0], [], []>} : vector<8x3xf32>, vector<8x3xf32>, vector<8x8xf32> -> vector<8x8xf32>
    %376 = arith.mulf %373, %373 : vector<8x3xf32>
    %cst_182 = arith.constant dense<0.000000e+00> : vector<8x8xf32>
    %377 = tpu.matmul %376, %10, %cst_182 {dimension_numbers = #tpu.dot_dimension_numbers<[1], [0], [0], [1], [0, 0, 1, 1], [], []>} : vector<8x3xf32>, vector<3x8xf32>, vector<8x8xf32> -> vector<8x8xf32>
    %378 = arith.mulf %6, %377 : vector<8x8xf32>
    %cst_183 = arith.constant dense<0.000000e+00> : vector<8x8xf32>
    %379 = tpu.matmul %7, %378, %cst_183 {dimension_numbers = #tpu.dot_dimension_numbers<[1], [0], [0], [1], [0, 0, 1, 1], [], []>} : vector<8x8xf32>, vector<8x8xf32>, vector<8x8xf32> -> vector<8x8xf32>
    %380 = arith.addf %377, %379 : vector<8x8xf32>
    %cst_184 = arith.constant 2.000000e+00 : f32
    %381 = vector.broadcast %cst_184 : f32 to vector<8x8xf32>
    %382 = arith.mulf %381, %375 : vector<8x8xf32>
    %383 = arith.subf %380, %382 : vector<8x8xf32>
    %cst_185 = arith.constant 0.000000e+00 : f32
    %384 = vector.broadcast %cst_185 : f32 to vector<8x8xf32>
    %385 = arith.maximumf %383, %384 : vector<8x8xf32>
    %cst_186 = arith.constant 1.000000e+30 : f32
    %386 = vector.broadcast %cst_186 : f32 to vector<8x8xf32>
    %387 = arith.select %4, %386, %385 : vector<8x8xi1>, vector<8x8xf32>
    %cst_187 = arith.constant dense<0x7F800000> : vector<8xf32>
    %388 = vector.multi_reduction <minimumf>, %387, %cst_187 [1] : vector<8x8xf32> to vector<8xf32>
    %389 = vector.shape_cast %388 : vector<8xf32> to vector<8x1xf32>
    %390 = vector.broadcast %389 : vector<8x1xf32> to vector<8x8xf32>
    %391 = arith.cmpf ole, %387, %390 : vector<8x8xf32>
    %392 = arith.ori %4, %391 : vector<8x8xi1>
    %cst_188 = arith.constant 1.000000e+30 : f32
    %393 = vector.broadcast %cst_188 : f32 to vector<8x8xf32>
    %394 = arith.select %391, %393, %387 : vector<8x8xi1>, vector<8x8xf32>
    %cst_189 = arith.constant dense<0x7F800000> : vector<8xf32>
    %395 = vector.multi_reduction <minimumf>, %394, %cst_189 [1] : vector<8x8xf32> to vector<8xf32>
    %396 = vector.shape_cast %395 : vector<8xf32> to vector<8x1xf32>
    %397 = vector.broadcast %396 : vector<8x1xf32> to vector<8x8xf32>
    %398 = arith.cmpf ole, %394, %397 : vector<8x8xf32>
    %399 = arith.ori %392, %398 : vector<8x8xi1>
    %400 = arith.extui %399 : vector<8x8xi1> to vector<8x8xi32>
    %401 = arith.sitofp %400 : vector<8x8xi32> to vector<8x8xf32>
    %cst_190 = arith.constant -1.000000e+01 : f32
    %402 = vector.broadcast %cst_190 : f32 to vector<8x8xf32>
    %403 = arith.mulf %402, %385 : vector<8x8xf32>
    %404 = math.exp %403 : vector<8x8xf32>
    %cst_191 = arith.constant dense<0.000000e+00> : vector<8x1xf32>
    %405 = tpu.matmul %401, %8, %cst_191 {dimension_numbers = #tpu.dot_dimension_numbers<[1], [0], [0], [1], [0, 0, 1, 1], [], []>} : vector<8x8xf32>, vector<8x1xf32>, vector<8x1xf32> -> vector<8x1xf32>
    %406 = arith.mulf %404, %401 : vector<8x8xf32>
    %cst_192 = arith.constant dense<0.000000e+00> : vector<8x1xf32>
    %407 = tpu.matmul %406, %374, %cst_192 {dimension_numbers = #tpu.dot_dimension_numbers<[1], [0], [0], [1], [0, 0, 1, 1], [], []>} : vector<8x8xf32>, vector<8x1xf32>, vector<8x1xf32> -> vector<8x1xf32>
    %408 = arith.divf %407, %405 : vector<8x1xf32>
    %cst_193 = arith.constant dense<0.000000e+00> : vector<8x8xf32>
    %409 = tpu.matmul %374, %9, %cst_193 {dimension_numbers = #tpu.dot_dimension_numbers<[1], [0], [0], [1], [0, 0, 1, 1], [], []>} : vector<8x1xf32>, vector<1x8xf32>, vector<8x8xf32> -> vector<8x8xf32>
    %410 = arith.mulf %6, %409 : vector<8x8xf32>
    %cst_194 = arith.constant dense<0.000000e+00> : vector<8x8xf32>
    %411 = tpu.matmul %7, %410, %cst_194 {dimension_numbers = #tpu.dot_dimension_numbers<[1], [0], [0], [1], [0, 0, 1, 1], [], []>} : vector<8x8xf32>, vector<8x8xf32>, vector<8x8xf32> -> vector<8x8xf32>
    %412 = arith.mulf %404, %411 : vector<8x8xf32>
    %cst_195 = arith.constant -1.000000e+30 : f32
    %413 = vector.broadcast %cst_195 : f32 to vector<8x8xf32>
    %414 = arith.select %399, %412, %413 : vector<8x8xi1>, vector<8x8xf32>
    %cst_196 = arith.constant dense<0xFF800000> : vector<8xf32>
    %415 = vector.multi_reduction <maximumf>, %414, %cst_196 [1] : vector<8x8xf32> to vector<8xf32>
    %416 = vector.shape_cast %415 : vector<8xf32> to vector<8x1xf32>
    %c104_197 = arith.constant 104 : index
    %c0_198 = arith.constant 0 : index
    %417 = vector.load %arg2[%c104_197, %c0_198] : memref<128x128xf32, #tpu.memory_space<vmem>>, vector<8x128xf32>
    %418 = vector.extract_strided_slice %417 {offsets = [0, 120], sizes = [8, 8], strides = [1, 1]} : vector<8x128xf32> to vector<8x8xf32>
    %cst_199 = arith.constant dense<0.000000e+00> : vector<8x8xf32>
    %419 = tpu.matmul %365, %418, %cst_199 {dimension_numbers = #tpu.dot_dimension_numbers<[1], [0], [0], [1], [0, 0, 1, 1], [], []>} : vector<8x8xf32>, vector<8x8xf32>, vector<8x8xf32> -> vector<8x8xf32>
    %c112 = arith.constant 112 : index
    %c0_200 = arith.constant 0 : index
    %420 = vector.load %arg2[%c112, %c0_200] : memref<128x128xf32, #tpu.memory_space<vmem>>, vector<1x128xf32>
    %421 = vector.extract_strided_slice %420 {offsets = [0, 0], sizes = [1, 8], strides = [1, 1]} : vector<1x128xf32> to vector<1x8xf32>
    %cst_201 = arith.constant dense<0.000000e+00> : vector<8x8xf32>
    %422 = tpu.matmul %408, %421, %cst_201 {dimension_numbers = #tpu.dot_dimension_numbers<[1], [0], [0], [1], [0, 0, 1, 1], [], []>} : vector<8x1xf32>, vector<1x8xf32>, vector<8x8xf32> -> vector<8x8xf32>
    %423 = arith.addf %419, %422 : vector<8x8xf32>
    %c112_202 = arith.constant 112 : index
    %c0_203 = arith.constant 0 : index
    %424 = vector.load %arg2[%c112_202, %c0_203] : memref<128x128xf32, #tpu.memory_space<vmem>>, vector<1x128xf32>
    %425 = vector.extract_strided_slice %424 {offsets = [0, 8], sizes = [1, 8], strides = [1, 1]} : vector<1x128xf32> to vector<1x8xf32>
    %cst_204 = arith.constant dense<0.000000e+00> : vector<8x8xf32>
    %426 = tpu.matmul %416, %425, %cst_204 {dimension_numbers = #tpu.dot_dimension_numbers<[1], [0], [0], [1], [0, 0, 1, 1], [], []>} : vector<8x1xf32>, vector<1x8xf32>, vector<8x8xf32> -> vector<8x8xf32>
    %427 = arith.addf %423, %426 : vector<8x8xf32>
    %c112_205 = arith.constant 112 : index
    %c0_206 = arith.constant 0 : index
    %428 = vector.load %arg2[%c112_205, %c0_206] : memref<128x128xf32, #tpu.memory_space<vmem>>, vector<1x128xf32>
    %429 = vector.extract_strided_slice %428 {offsets = [0, 16], sizes = [1, 8], strides = [1, 1]} : vector<1x128xf32> to vector<1x8xf32>
    %430 = vector.broadcast %429 : vector<1x8xf32> to vector<8x8xf32>
    %431 = arith.addf %427, %430 : vector<8x8xf32>
    %c112_207 = arith.constant 112 : index
    %c0_208 = arith.constant 0 : index
    %432 = vector.load %arg2[%c112_207, %c0_208] : memref<128x128xf32, #tpu.memory_space<vmem>>, vector<8x128xf32>
    %433 = vector.extract_strided_slice %432 {offsets = [0, 24], sizes = [8, 32], strides = [1, 1]} : vector<8x128xf32> to vector<8x32xf32>
    %cst_209 = arith.constant dense<0.000000e+00> : vector<8x32xf32>
    %434 = tpu.matmul %431, %433, %cst_209 {dimension_numbers = #tpu.dot_dimension_numbers<[1], [0], [0], [1], [0, 0, 1, 1], [], []>} : vector<8x8xf32>, vector<8x32xf32>, vector<8x32xf32> -> vector<8x32xf32>
    %c112_210 = arith.constant 112 : index
    %c0_211 = arith.constant 0 : index
    %435 = vector.load %arg2[%c112_210, %c0_211] : memref<128x128xf32, #tpu.memory_space<vmem>>, vector<1x128xf32>
    %436 = vector.extract_strided_slice %435 {offsets = [0, 56], sizes = [1, 32], strides = [1, 1]} : vector<1x128xf32> to vector<1x32xf32>
    %437 = vector.broadcast %436 : vector<1x32xf32> to vector<8x32xf32>
    %438 = arith.addf %434, %437 : vector<8x32xf32>
    %cst_212 = arith.constant 0.000000e+00 : f32
    %439 = vector.broadcast %cst_212 : f32 to vector<8x32xf32>
    %440 = arith.maximumf %438, %439 : vector<8x32xf32>
    %c64_213 = arith.constant 64 : index
    %c0_214 = arith.constant 0 : index
    %441 = vector.load %arg2[%c64_213, %c0_214] : memref<128x128xf32, #tpu.memory_space<vmem>>, vector<32x128xf32>
    %442 = vector.extract_strided_slice %441 {offsets = [0, 52], sizes = [32, 32], strides = [1, 1]} : vector<32x128xf32> to vector<32x32xf32>
    %cst_215 = arith.constant dense<0.000000e+00> : vector<8x32xf32>
    %443 = tpu.matmul %440, %442, %cst_215 {dimension_numbers = #tpu.dot_dimension_numbers<[1], [0], [0], [1], [0, 0, 1, 1], [], []>} : vector<8x32xf32>, vector<32x32xf32>, vector<8x32xf32> -> vector<8x32xf32>
    %c112_216 = arith.constant 112 : index
    %c0_217 = arith.constant 0 : index
    %444 = vector.load %arg2[%c112_216, %c0_217] : memref<128x128xf32, #tpu.memory_space<vmem>>, vector<1x128xf32>
    %445 = vector.extract_strided_slice %444 {offsets = [0, 88], sizes = [1, 32], strides = [1, 1]} : vector<1x128xf32> to vector<1x32xf32>
    %446 = vector.broadcast %445 : vector<1x32xf32> to vector<8x32xf32>
    %447 = arith.addf %443, %446 : vector<8x32xf32>
    %cst_218 = arith.constant 0.000000e+00 : f32
    %448 = vector.broadcast %cst_218 : f32 to vector<8x32xf32>
    %449 = arith.maximumf %447, %448 : vector<8x32xf32>
    %c64_219 = arith.constant 64 : index
    %c0_220 = arith.constant 0 : index
    %450 = vector.load %arg2[%c64_219, %c0_220] : memref<128x128xf32, #tpu.memory_space<vmem>>, vector<32x128xf32>
    %451 = vector.extract_strided_slice %450 {offsets = [0, 84], sizes = [32, 32], strides = [1, 1]} : vector<32x128xf32> to vector<32x32xf32>
    %cst_221 = arith.constant dense<0.000000e+00> : vector<8x32xf32>
    %452 = tpu.matmul %449, %451, %cst_221 {dimension_numbers = #tpu.dot_dimension_numbers<[1], [0], [0], [1], [0, 0, 1, 1], [], []>} : vector<8x32xf32>, vector<32x32xf32>, vector<8x32xf32> -> vector<8x32xf32>
    %c120 = arith.constant 120 : index
    %c0_222 = arith.constant 0 : index
    %453 = vector.load %arg2[%c120, %c0_222] : memref<128x128xf32, #tpu.memory_space<vmem>>, vector<1x128xf32>
    %454 = vector.extract_strided_slice %453 {offsets = [0, 0], sizes = [1, 32], strides = [1, 1]} : vector<1x128xf32> to vector<1x32xf32>
    %455 = vector.broadcast %454 : vector<1x32xf32> to vector<8x32xf32>
    %456 = arith.addf %452, %455 : vector<8x32xf32>
    %cst_223 = arith.constant 0.000000e+00 : f32
    %457 = vector.broadcast %cst_223 : f32 to vector<8x32xf32>
    %458 = arith.maximumf %456, %457 : vector<8x32xf32>
    %cst_224 = arith.constant 0.000000e+00 : f32
    %459 = vector.broadcast %cst_224 : f32 to vector<8x96xf32>
    %460 = tpu.concatenate %458, %459 in 1 : vector<8x32xf32>, vector<8x96xf32> -> vector<8x128xf32>
    %c0_225 = arith.constant 0 : index
    %c0_226 = arith.constant 0 : index
    %c0_227 = arith.constant 0 : index
    %461 = vector.load %arg3[%c0_225, %c0_226, %c0_227] : memref<1x8x128xf32, #tpu.memory_space<vmem>>, vector<1x8x128xf32>
    %462 = vector.shape_cast %461 : vector<1x8x128xf32> to vector<8x128xf32>
    %463 = vector.shape_cast %460 : vector<8x128xf32> to vector<1x8x128xf32>
    tpu.vector_store %arg3[%c0_225, %c0_226, %c0_227], %463 {strides = array<i32>} : memref<1x8x128xf32, #tpu.memory_space<vmem>>, vector<1x8x128xf32>,
    return
  }
  func.func @transform_0(%arg0: i32) -> (i32, i32, i32) {
    %c0_i32 = arith.constant 0 : i32
    %c0_i32_0 = arith.constant 0 : i32
    %c0_i32_1 = arith.constant 0 : i32
    return %arg0, %c0_i32, %c0_i32_0 : i32, i32, i32
  }
  func.func @transform_1(%arg0: i32) -> (i32, i32) {
    %c0_i32 = arith.constant 0 : i32
    %c0_i32_0 = arith.constant 0 : i32
    %c0_i32_1 = arith.constant 0 : i32
    return %c0_i32, %c0_i32_0 : i32, i32
  }
  func.func @transform_2(%arg0: i32) -> (i32, i32, i32) {
    %c0_i32 = arith.constant 0 : i32
    %c0_i32_0 = arith.constant 0 : i32
    %c0_i32_1 = arith.constant 0 : i32
    return %arg0, %c0_i32, %c0_i32_0 : i32, i32, i32
  }
}

</mosaic_0001>

<bundles_post_ra>
// kernel: tpu_custom_call.1
= control target key start
LH: loop header
LB: loop body
LE: loop exit
PB: predicated region body
PF: predicated region fallthrough
CT: control target
= control target key end

     0   :  { %7 = vsyncpa [#allocation3], 0  ;;  %s7997_s0 = inlined_call_operand.hbm [shape: f32[4,8,16], index: 0, kind: input, shape index: {}]   ;;  %s7998_s1 = inlined_call_operand.hbm [shape: f32[128,128], index: 1, kind: input, shape index: {}]   ;;  %s7999_s2 = inlined_call_operand.hbm [shape: f32[4,8,128], index: 2, kind: output, shape index: {}]  }
   0x1   :  { %9 = vsyncpa [#allocation3 + $0x1], 0 }
   0x2   :  { %10 = vsyncpa [#allocation6], 0 }
   0x3   :  { %11 = vsyncpa [#allocation4], 0 }
   0x4   :  { %13 = vsyncpa [#allocation4 + $0x1], 0  ;;  %s7187_s9 = smov 0   ;;  %s7189_s10 = smov 0  }
   0x5   :  { %s7191_s11 = smov 0   ;;  %s7193_s12 = smov 0  }
   0x6 LB: > { %s7208_s13 = sadd.s32 4294967295, %s7143_s12   ;;  %s5995_s14 = sadd.s32 4294967294, %s7143_s12   ;;  %s7143_s12 = sphi %s7193_s12, %s8032_s12   ;;  %s7139_s11 = sphi %s7191_s11, %s8031_s11   ;;  %s7135_s10 = sphi %s7189_s10, %s8030_s10   ;;  %s7131_s9 = sphi %s7187_s9, %s8029_s9  }
   0x7   : > { %p39_p0 = scmp.ne.s32.totalorder %s7135_s10, %s7131_s9  ;;  %p8000_p1 = scmp.eq.s32.totalorder %s7208_s13, 0 }
   0x8   : > { %p90_p3 = scmp.eq.s32.totalorder %s5995_s14, 3  ;;  %p5996_p5 = scmp.ge.s32.totalorder %s7143_s12, 1 }
   0x9   : > { %p7217_p4 = por %p8000_p1, %p39_p0  ;;  %p97_p7 = scmp.lt.s32.totalorder %s7143_s12, 5 }
   0xa   : > { %p7222_p6 = por %p90_p3, %p39_p0  ;;  %s7145_s18 = smov [#allocation5]  }
   0xb   : > { %s8003_s15 = scalar_select %p7217_p4, 1, 0 }
   0xc   : > { %s8004_s16 = scalar_select %p7222_p6, 1, 0 }
   0xd   : > { %p7227_p8 = pnand %p5996_p5, %p97_p7  ;;  %s109_s19 = sshll.u32 %s7145_s18, 4  ;;  %s110_s19 = int_to_ptr.vmem [resolvable:$true] %s109_s19 }
   0xe   : > { %s7240_s21 = sadd.s32 1, %s7143_s12   ;;  %s26_s22 = sadd.s32 1, %s7139_s11 }
   0xf   : > { %s8005_s17 = scalar_select %p7227_p8, 1, 0 }
  0x10   : > { %p6812_p9 = pneg %p7227_p8  ;;  %s23_s23 = ssub.s32 %s7143_s12, %s7240_s21 }
  0x11   : > { %s7015_s26 = scalar_lea.hbm %s7998_s1, 2048 }
  0x12   : > { %p7235_p10 = pnand %p6812_p9, %p8000_p1  ;;  %p7016_p11 = scmp.ne.s32.totalorder %s7998_s1, %s7015_s26 }
  0x13   : > { %p7022_p3 = scmp.lt.u32.totalorder %s7015_s26, %s7998_s1 }
  0x14   : > { %p7017_p12 = pneg %p7235_p10 }
  0x16   : > { %p7018_p13 = pnand %p7017_p12, %p7016_p11 }
  0x18   : > { %p7019_p0 = pneg %p7018_p13 }
  0x1a   : > { %p7024_p5 = pnand %p7022_p3, %p7019_p0 }
  0x1c   : > { %7027 = shalt.err (!%p7024_p5)
}
  0x1d   : > { %s7028_s3 = scalar_lea.vmem %s110_s19, 2048  ;;  %p7036_p2 = scmp.lt.s32.totalorder %s110_s19, %s110_s19 }
  0x1e   : > { %p7029_p7 = scmp.ne.s32.totalorder %s110_s19, %s7028_s3  ;;  %p7037_p6 = scmp.lt.s32.totalorder %s7028_s3, %s7028_s3 }
  0x20   : > { %p7031_p9 = pnand %p7029_p7, %p7017_p12  ;;  %p7038_p4 = por %p7037_p6, %p7036_p2 }
  0x22   : > { %p7032_p1 = pneg %p7031_p9 }
  0x24   : > { %p7039_p8 = pnand %p7038_p4, %p7032_p1 }
  0x26   : > { %7042 = shalt.err (!%p7039_p8)
}
  0x27   : > { %s7146_s4 = smov 128   ;;  %s7147_s5 = smov 8  }
  0x28   : > { %6815 = dma.hbm_to_vmem [thread:$0]  (!%p7235_p10), %s7998_s1, 2048, %s110_s19, [#allocation6], %s7146_s4, %s7146_s4, %s7147_s5  }
  0x29   : > { %p24_p11 = scmp.eq.s32.totalorder %s23_s23, 0  ;;  %p33_p2 = scmp.ne.s32.totalorder %s7139_s11, %s7135_s10 }
  0x2a   : > { %p34_p1 = scmp.eq.s32.totalorder %s7143_s12, 0  ;;  %p6825_p4 = scmp.lt.s32.totalorder %s7143_s12, 4 }
  0x2b   : > { %s7266_s8 = scalar_select %p24_p11, %s7139_s11, %s26_s22  }
  0x2c   : > { %p35_p6 = por %p34_p1, %p33_p2  ;;  %p8007_p8 = scmp.eq.s32.totalorder %s7208_s13, 3 }
  0x2d   : > { %s123_s18 = sand.u32 1, %s7139_s11   ;;  %s6000_s24 = sshll.u32 %s7143_s12, 7 }
  0x2e   : > { %p7270_p12 = por %p8007_p8, %p33_p2  ;;  %s5999_s25 = sshll.u32 %s123_s18, 3 }
  0x2f   : > { %s7279_s27 = scalar_lea.hbm %s7997_s0, %s6000_s24  ;;  %s127_s19 = scalar_lea.vmem [#allocation2], %s5999_s25 }
  0x30   : > { %s134_s22 = sshll.u32 %s127_s19, 4  ;;  %p7281_p10 = pnand %p6825_p4, %p35_p6  ;;  %s7285_s22 = int_to_ptr.vmem [resolvable:$true] %s134_s22 }
  0x31   : > { %s124_s28 = scalar_lea.sflag [#allocation3], %s123_s18  ;;  %s7043_s29 = scalar_lea.hbm %s7279_s27, 128 }
  0x32   : > { %p7044_p13 = scmp.ne.s32.totalorder %s7279_s27, %s7043_s29  ;;  %p7045_p0 = pneg %p7281_p10 }
  0x33   : > { %s7048_s4 = scalar_lea.hbm %s7997_s0, 512  ;;  %p7049_p7 = scmp.lt.u32.totalorder %s7279_s27, %s7997_s0 }
  0x34   : > { %p7046_p3 = pnand %p7045_p0, %p7044_p13  ;;  %p7050_p9 = scmp.lt.u32.totalorder %s7048_s4, %s7043_s29 }
  0x35   : > { %p7052_p2 = scmp.lt.u32.totalorder %s7043_s29, %s7279_s27 }
  0x36   : > { %p7047_p5 = pneg %p7046_p3  ;;  %p7051_p11 = por %p7050_p9, %p7049_p7 }
  0x38   : > { %p7053_p1 = por %p7052_p2, %p7051_p11 }
  0x3a   : > { %p7054_p4 = pnand %p7053_p1, %p7047_p5 }
  0x3c   : > { %7057 = shalt.err (!%p7054_p4)
}
  0x3d   : > { %s7058_s7 = scalar_lea.vmem %s7285_s22, 128  ;;  %s7148_s18 = smov [#allocation2]  }
  0x3e   : > { %p7059_p6 = scmp.ne.s32.totalorder %s7285_s22, %s7058_s7  ;;  %s7063_s24 = sshll.u32 %s7148_s18, 4  ;;  %s7064_s24 = int_to_ptr.vmem [resolvable:$false] %s7063_s24 }
  0x3f   : > { %s7065_s25 = scalar_lea.vmem %s7064_s24, 256  ;;  %p7066_p3 = scmp.lt.s32.totalorder %s7285_s22, %s7064_s24 }
  0x40   : > { %p7061_p8 = pnand %p7059_p6, %p7045_p0  ;;  %p7067_p7 = scmp.lt.s32.totalorder %s7065_s25, %s7058_s7 }
  0x42   : > { %p7062_p13 = pneg %p7061_p8  ;;  %p7068_p9 = por %p7067_p7, %p7066_p3 }
  0x44   : > { %p7069_p11 = pnand %p7068_p9, %p7062_p13 }
  0x46   : > { %7072 = shalt.err (!%p7069_p11)
}
  0x47   : > { %6819 = dma.hbm_to_vmem [thread:$0]  (!%p7281_p10), %s7279_s27, 128, %s7285_s22, %s124_s28  }
  0x48   : > { %p8010_p5 = scmp.ne.s32.totalorder %s8005_s17, 0 }
  0x49   : > { %s7315_s20 = sand.u32 (!%p8010_p5), 1, %s7135_s10   ;;  %p8011_p0 = scmp.ne.s32.totalorder (!%p8010_p5), %s8003_s15, 0 }
  0x4a   : > { %143 = sbr.rel (%p8010_p5) target bundleno = 11855 (0x2e4f), region = 28  ;;  %s6002_s26 = sshll.u32 (!%p8010_p5), %s7315_s20, 3 }
  0x4b   : > { %s146_s19 = scalar_lea.sflag (!%p8010_p5), [#allocation3], %s7315_s20  ;;  %s149_s29 = scalar_lea.vmem (!%p8010_p5), [#allocation2], %s6002_s26 }
  0x51   : > { %7118 = dma.done.wait (%p8011_p0), %s146_s19, 128  }
  0x52   : > { %7120 = vsyncadd (%p8011_p0), %s146_s19, 4294967168  ;;  %p8012_p10 = scmp.eq.s32.totalorder %s7208_s13, 0 }
  0x54   : > { %7122 = dma.done.wait (%p8012_p10), [#allocation6], 2048   ;;  %p8013_p2 = pmov %p8012_p10 }
  0x55   : > { %v7149_v0 = vmov 0.0|0.0   ;;  %vm7150_vm0 = vmmov 0   ;;  %v7151_v1 = vmov 0.0   ;;  %v7335_v2 = vld [vmem:[#allocation5] sm:$0xff]  ;;  %v7337_v3 = vld [vmem:[#allocation5 + $0x8] sm:$0xff]  ;;  %v263_v5 = vld [vmem:[#allocation5 + $0x18] sm:$0xff]  ;;  %v175_v50 = vlaneseq }
  0x56   : > { %7124 = vsyncadd (%p8013_p2), [#allocation6], 4294965248  ;;  %6729 = vmatprep.subr.bf16.mxu0 %v7149_v0  ;;  %6303 = vmatprep.mubr.msk.f32.mxu0 %vm7150_vm0, %v7151_v1  ;;  %v6730_v4 = vpack.c.bf16 %v7337_v3, %v7335_v2  ;;  %v264_v6 = vld [vmem:[#allocation5 + $0x20] sm:$0xff]  ;;  %v174_v8 = vld [vmem:[%s149_s29] sm:$0xff]  ;;  %vm189_vm1 = vcmask 130048   ;;  %s7152_s15 = smov 96  }
  0x57   : > { %6732 = vmatprep.subr.bf16.mxu1 %v7149_v0  ;;  %6314 = vmatprep.mubr.msk.f32.mxu1 %vm7150_vm0, %v7151_v1  ;;  %v6733_v7 = vpack.c.bf16 %v264_v6, %v263_v5  ;;  %v265_v9 = vld [vmem:[#allocation5 + $0x28] sm:$0xff]  ;;  %v266_v10 = vld [vmem:[#allocation5 + $0x30] sm:$0xff]  ;;  %v7347_v13 = vpack.i.bf16 %v264_v6, %v263_v5  ;;  %vm271_vm2 = vcmask 261120   ;;  %s7153_s17 = smov 64   ;;  %s7154_s27 = smov 32   ;;  %vm527_vm3 = vcmask 23552  }
  0x58   : > { %6731 = vmatpush3.bf16.msra.mxu0 %v6730_v4  ;;  %v6736_v11 = vpack.c.bf16 %v266_v10, %v265_v9  ;;  %v6006_v12 = vld [vmem:[#allocation5 + $0x10] ss:$0 sm:$0xff]  ;;  %v7352_v14 = vpack.i.bf16 %v266_v10, %v265_v9  ;;  %vm605_vm4 = vcmask 1042432   ;;  %v7155_v48 = vmov 1.0   ;;  %s7156_s22 = smov 125   ;;  %s7157_s23 = smov 60  }
  0x59   : > { %6734 = vmatpush3.bf16.msra.mxu1 %v6733_v7  ;;  %6738 = vmatprep.subr.bf16.mxu0 %v7149_v0  ;;  %v176_v51 = vand.u32 127, %v175_v50  ;;  %v7393_v52 = vshrl.u32 %v175_v50, 7  ;;  %vm680_vm6 = vcmask 64512   ;;  %vm929_vm11 = vcmask 1040384   ;;  %s7158_s28 = smov 28   ;;  %s7159_s30 = smov 92  }
  0x5a   : > { %6735 = vmatprep.subr.bf16.mxu1 %v7149_v0  ;;  %268 = vrot.lane.b32.xlu1 %v6006_v12, %s7152_s15  ;;  %vm926_vm12 = vcmask 7168   ;;  %s7160_s3 = smov 112   ;;  %s7161_s4 = smov 76   ;;  %v5400_v53 = vld [vmem:[#allocation5 + $0x70] sm:$0x1] }
  0x5b   : > { %6304 = vmatmul.mubr.msk.f32.vlgmr.msra.gmra.mrb[0].mxu0 %vm189_vm1, %v174_v8  ;;  %6886 = vrot.lane.b32.xlu0 %v7347_v13, %s7152_s15  ;;  %vm7396_vm5 = vcmp.eq.s32.totalorder %v176_v51, %v7393_v52  ;;  %s7162_s5 = smov 44   ;;  %s7163_s6 = smov 72  }
  0x5c   : > { %6325 = vmatprep.mubr.msk.f32.mxu0 %vm7150_vm0, %v7151_v1  ;;  %v7403_v56 = vsel %vm7396_vm5, 1.0, %v7151_v1  ;;  %s7164_s7 = smov 40   ;;  %s7165_s18 = smov 24  }
  0x5d   : > { %6737 = vmatpush3.bf16.msra.mxu1 %v6736_v11  ;;  %s7166_s24 = smov 16   ;;  %s7167_s25 = smov 12  }
  0x5e   : > { %6744 = vmatprep.subr.bf16.mxu1 %v7149_v0  ;;  %6896 = vrot.lane.b32.xlu1 %v7347_v13, %s7153_s17  ;;  %s7168_s19 = smov 120   ;;  %s7169_s29 = smov 8  }
  0x5f   : > { %6891 = vrot.lane.b32.xlu0 %v7352_v14, %s7152_s15 }
  0x62   : > { %362 = vrot.lane.b32.xlu1 %v6006_v12, %s7153_s17 }
  0x63   : > { %6901 = vrot.lane.b32.xlu0 %v7352_v14, %s7153_s17 }
  0x67   : > { %451 = vrot.lane.b32.xlu0 %v6006_v12, %s7154_s27 }
  0xcc   : > { %v269_v26 = vpop.permute.xlu1 %268 }
  0xcd   : > { %v6887_v15 = vpop.permute.xlu0 %6886 }
  0xce   : > { %v6889_v16 = vunpack.i.h.bf16 %v6887_v15  ;;  %v6888_v17 = vunpack.i.l.bf16 %v6887_v15 }
  0xd0   : > { %v6739_v18 = vpack.c.bf16 %v6889_v16, %v6888_v17  ;;  %v6897_v27 = vpop.permute.xlu1 %6896 }
  0xd1   : > { %v6892_v19 = vpop.permute.xlu0 %6891  ;;  %v6899_v29 = vunpack.i.h.bf16 %v6897_v27  ;;  %v6898_v30 = vunpack.i.l.bf16 %v6897_v27 }
  0xd2   : > { %v6894_v20 = vunpack.i.h.bf16 %v6892_v19  ;;  %v6893_v21 = vunpack.i.l.bf16 %v6892_v19  ;;  %6740 = vmatpush3.bf16.msra.mxu0 %v6739_v18 }
  0xd3   : > { %6741 = vmatprep.subr.bf16.mxu0 %v7149_v0  ;;  %v6745_v33 = vpack.c.bf16 %v6899_v29, %v6898_v30 }
  0xd4   : > { %v6742_v22 = vpack.c.bf16 %v6894_v20, %v6893_v21  ;;  %v363_v39 = vpop.permute.xlu1 %362  ;;  %v1078_v21 = vld [vmem:[#allocation5 + $0x38] sm:$0x1] }
  0xd5   : > { %v6902_v28 = vpop.permute.xlu0 %6901 }
  0xd6   : > { %6743 = vmatpush3.bf16.msra.mxu0 %v6742_v22  ;;  %v6904_v31 = vunpack.i.h.bf16 %v6902_v28  ;;  %v6903_v32 = vunpack.i.l.bf16 %v6902_v28 }
  0xd7   : > { %6339 = vmatprep.subr.mxu0 %v7151_v1 }
  0xd8   : > { %v6748_v34 = vpack.c.bf16 %v6904_v31, %v6903_v32 }
  0xd9   : > { %v452_v44 = vpop.permute.xlu0 %451 }
 0x12e   : > { %v259_v23 = vpop.f32.mrb[0].mxu0 }
 0x12f   : > { %v260_v24 = vadd.f32 %v6006_v12, %v259_v23  ;;  %v6305_v25 = vpop.f32.mrb[1].mxu0 }
 0x131   : > { %6315 = vmatmul.mubr.msk.f32.vlgmr.msra.gmra.mrb[0].mxu1 %vm271_vm2, %v260_v24 }
 0x132   : > { %6336 = vmatprep.mubr.msk.f32.mxu1 %vm7150_vm0, %v7151_v1  ;;  %6746 = vmatpush3.bf16.msra.mxu1 %v6745_v33 }
 0x133   : > { %6747 = vmatprep.subr.bf16.mxu1 %v7149_v0 }
 0x136   : > { %6749 = vmatpush3.bf16.msra.mxu1 %v6748_v34 }
 0x137   : > { %6349 = vmatprep.subr.mxu1 %v7151_v1 }
 0x204   : > { %v341_v35 = vpop.f32.mrb[0].mxu1 }
 0x205   : > { %v342_v36 = vadd.f32 %v341_v35, %v269_v26  ;;  %v6316_v37 = vpop.f32.mrb[1].mxu1 }
 0x207   : > { %v345_v38 = vmax.f32 %v342_v36, 0.0 }
 0x209   : > { %6326 = vmatmul.mubr.msk.f32.vlgmr.msra.gmra.mrb[2].mxu0 %vm271_vm2, %v345_v38 }
 0x20a   : > { %6341 = vmatprep.mubr.msk.f32.mxu0 %vm7150_vm0, %v7151_v1 }
 0x2dc   : > { %v434_v40 = vpop.f32.mrb[2].mxu0 }
 0x2dd   : > { %v7372_v41 = vadd.f32 %v434_v40, %v363_v39  ;;  %v6327_v42 = vpop.f32.mrb[3].mxu0 }
 0x2df   : > { %v438_v43 = vmax.f32 %v7372_v41, 0.0  ;;  %v7465_v41 = vsub.s32 0, %v7393_v52 }
 0x2e1   : > { %6337 = vmatmul.mubr.msk.f32.vlgmr.msra.gmra.mrb[2].mxu1 %vm271_vm2, %v438_v43 }
 0x2e2   : > { %6351 = vmatprep.mubr.msk.f32.mxu1 %vm7150_vm0, %v7151_v1 }
 0x3b4   : > { %v523_v45 = vpop.f32.mrb[2].mxu1 }
 0x3b5   : > { %v524_v46 = vadd.f32 %v523_v45, %v452_v44  ;;  %v6338_v47 = vpop.f32.mrb[3].mxu1 }
 0x3b7   : > { %6340 = vmatpush3.xpose.msk.msra.mxu0 %vm527_vm3, %v524_v46  ;;  %v601_v49 = vmul.f32 %v524_v46, %v524_v46 }
 0x3b8   : > { %6344 = vmatprep.subr.mxu0 %v7151_v1 }
 0x3ba   : > { %6342 = vmatmul.mubr.msk.f32.vlgmr.msra.gmra.mrb[4].mxu0 %vm527_vm3, %v524_v46 }
 0x3bb   : > { %6345 = vmatpush3.msk.msra.mxu0 %vm605_vm4, %v7155_v48  ;;  %6346 = vmatprep.mubr.msk.f32.mxu0 %vm7150_vm0, %v7151_v1 }
 0x3bc   : > { %6354 = vmatprep.subr.mxu0 %v7151_v1 }
 0x3be   : > { %6347 = vmatmul.mubr.msk.f32.vlgmr.msra.gmra.mrb[6].mxu0 %vm527_vm3, %v601_v49 }
 0x3bf   : > { %6355 = vmatpush3.msra.mxu0 %v7155_v48  ;;  %6356 = vmatprep.mubr.msk.f32.mxu0 %vm7150_vm0, %v7151_v1 }
 0x3c0   : > { %6364 = vmatprep.subr.mxu0 %v7151_v1 }
 0x48d   : > { %v597_v54 = vpop.f32.mrb[4].mxu0 }
 0x48e   : > { %v6343_v55 = vpop.f32.mrb[5].mxu0  ;;  %v754_v61 = vmul.f32 2.0, %v597_v54 }
 0x491   : > { %v675_v57 = vpop.f32.mrb[6].mxu0 }
 0x492   : > { %v679_v58 = vmul.f32 %v7403_v56, %v675_v57  ;;  %v6348_v59 = vpop.f32.mrb[7].mxu0 }
 0x494   : > { %6350 = vmatpush3.msra.mxu1 %v679_v58 }
 0x495   : > { %6352 = vmatmul.mubr.msk.f32.vlgmr.msra.gmra.mrb[4].mxu1 %vm680_vm6, %v7155_v48  ;;  %6359 = vmatprep.subr.mxu1 %v7151_v1 }
 0x496   : > { %6361 = vmatprep.mubr.msk.f32.mxu1 %vm7150_vm0, %v7151_v1 }
 0x568   : > { %v749_v60 = vpop.f32.mrb[4].mxu1 }
 0x569   : > { %v753_v62 = vadd.f32 %v749_v60, %v675_v57  ;;  %v6353_v63 = vpop.f32.mrb[5].mxu1 }
 0x56b   : > { %v755_v4 = vsub.f32 %v753_v62, %v754_v61 }
 0x56d   : > { %v756_v5 = vmax.f32 %v755_v4, 0.0 }
 0x56f   : > { %v757_v6 = vsel %vm7396_vm5, 1e+30, %v756_v5  ;;  %v771_v11 = vmul.f32 -10.0, %v756_v5 }
 0x570   : > { %v758_v7 = vsel %vm680_vm6, %v757_v6, inf }
 0x571   : > { %759 = vmin.xlane.f32.xlu1 %v758_v7  ;;  %v772_v12 = vmul.f32 1.442695, %v771_v11 }
 0x573   : > { %6985 = vpow2.f32 %v772_v12 }
 0x57d   : > { %v6986_v17 = vpop.eup %6985 }
 0x582   : > { %6906 = vrot.lane.b32.xlu1 %v7347_v13, %s7157_s23 }
 0x5fe   : > { %v760_v8 = vpop.xlane.xlu1 %759 }
 0x5ff   : > { %vm761_vm7 = vcmp.le.f32.partialorder %v757_v6, %v760_v8 }
 0x600   : > { %v763_v9 = vsel %vm761_vm7, 1e+30, %v757_v6  ;;  %vm762_vm8 = vmor %vm7396_vm5, %vm761_vm7 }
 0x601   : > { %v764_v10 = vsel %vm680_vm6, %v763_v9, inf }
 0x602   : > { %765 = vmin.xlane.f32.xlu0 %v764_v10  ;;  %v6907_v22 = vpop.permute.xlu1 %6906 }
 0x603   : > { %v6909_v25 = vunpack.i.h.bf16 %v6907_v22  ;;  %v6908_v26 = vunpack.i.l.bf16 %v6907_v22 }
 0x605   : > { %v6751_v31 = vpack.c.bf16 %v6909_v25, %v6908_v26 }
 0x618   : > { %848 = vrot.lane.b32.xlu0 %v524_v46, %s7156_s22 }
 0x61c   : > { %6911 = vrot.lane.b32.xlu0 %v7352_v14, %s7157_s23 }
 0x620   : > { %6916 = vrot.lane.b32.xlu0 %v7347_v13, %s7158_s28 }
 0x68f   : > { %v766_v15 = vpop.xlane.xlu0 %765 }
 0x690   : > { %vm767_vm9 = vcmp.le.f32.partialorder %v763_v9, %v766_v15 }
 0x691   : > { %vm7422_vm10 = vmor %vm762_vm8, %vm767_vm9 }
 0x692   : > { %v6016_v18 = vsel %vm7422_vm10, 1.0, %v7151_v1 }
 0x693   : > { %v847_v19 = vmul.f32 %v6986_v17, %v6016_v18  ;;  %v849_v20 = vpop.permute.xlu0 %848  ;;  %6357 = vmatmul.mubr.msk.f32.vlgmr.msra.gmra.mrb[8].mxu0 %vm680_vm6, %v6016_v18 }
 0x694   : > { %6360 = vmatpush3.msra.mxu1 %v849_v20  ;;  %6365 = vmatpush3.msk.msra.mxu0 %vm929_vm11, %v7155_v48 }
 0x695   : > { %6362 = vmatmul.mubr.msk.f32.vlgmr.msra.gmra.mrb[6].mxu1 %vm680_vm6, %v847_v19  ;;  %6366 = vmatprep.mubr.msk.f32.mxu0 %vm7150_vm0, %v7151_v1 }
 0x696   : > { %6369 = vmatprep.subr.mxu1 %v7151_v1  ;;  %6371 = vmatprep.mubr.msk.f32.mxu1 %vm7150_vm0, %v7151_v1 }
 0x697   : > { %6367 = vmatmul.mubr.msk.f32.vlgmr.msra.gmra.mrb[10].mxu0 %vm926_vm12, %v849_v20  ;;  %6374 = vmatprep.subr.mxu0 %v7151_v1  ;;  %v6912_v28 = vpop.permute.xlu0 %6911 }
 0x698   : > { %6376 = vmatprep.mubr.msk.f32.mxu0 %vm7150_vm0, %v7151_v1  ;;  %6375 = vmatpush3.msk.msra.mxu0 %vm929_vm11, %v1078_v21  ;;  %v6914_v34 = vunpack.i.h.bf16 %v6912_v28  ;;  %v6913_v35 = vunpack.i.l.bf16 %v6912_v28 }
 0x699   : > { %6390 = vmatprep.subr.mxu0 %v7151_v1 }
 0x69a   : > { %v6754_v36 = vpack.c.bf16 %v6914_v34, %v6913_v35 }
 0x69b   : > { %v6917_v54 = vpop.permute.xlu0 %6916 }
 0x69c   : > { %v6919_v55 = vunpack.i.h.bf16 %v6917_v54  ;;  %v6918_v57 = vunpack.i.l.bf16 %v6917_v54  ;;  %v1954_v54 = vld [vmem:[#allocation5 + $0x58] sm:$0xff] }
 0x69e   : > { %v6757_v59 = vpack.c.bf16 %v6919_v55, %v6918_v57 }
 0x766   : > { %v843_v23 = vpop.f32.mrb[8].mxu0 }
 0x767   : > { %6987 = vrcp.f32 %v843_v23  ;;  %v6358_v24 = vpop.f32.mrb[9].mxu0 }
 0x768   : > { %v920_v27 = vpop.f32.mrb[6].mxu1 }
 0x769   : > { %v6363_v29 = vpop.f32.mrb[7].mxu1 }
 0x76a   : > { %v998_v30 = vpop.f32.mrb[10].mxu0 }
 0x76b   : > { %v1002_v32 = vmul.f32 %v7403_v56, %v998_v30  ;;  %v6368_v33 = vpop.f32.mrb[11].mxu0 }
 0x76d   : > { %6370 = vmatpush3.msra.mxu1 %v1002_v32 }
 0x76e   : > { %6372 = vmatmul.mubr.msk.f32.vlgmr.msra.gmra.mrb[8].mxu1 %vm680_vm6, %v7155_v48  ;;  %6750 = vmatprep.subr.bf16.mxu1 %v7149_v0 }
 0x76f   : > { %6752 = vmatpush3.bf16.msra.mxu1 %v6751_v31  ;;  %6387 = vmatprep.mubr.msk.f32.mxu1 %vm7150_vm0, %v7151_v1 }
 0x770   : > { %6753 = vmatprep.subr.bf16.mxu1 %v7149_v0 }
 0x771   : > { %v6988_v37 = vpop.eup %6987 }
 0x772   : > { %v925_v38 = vmul.f32 %v6988_v37, %v920_v27 }
 0x773   : > { %6755 = vmatpush3.bf16.msra.mxu1 %v6754_v36 }
 0x774   : > { %6377 = vmatmul.mubr.msk.f32.vlgmr.msra.gmra.mrb[12].mxu0 %vm926_vm12, %v925_v38  ;;  %6406 = vmatprep.subr.mxu1 %v7151_v1  ;;  %v7533_v38 = vld [vmem:[#allocation5 + $0x60] sm:$0x1] }
 0x775   : > { %6392 = vmatprep.mubr.msk.f32.mxu0 %vm7150_vm0, %v7151_v1 }
 0x776   : > { %6388 = vmatmul.mubr.msk.f32.vlgmr.msra.gmra.mrb[10].mxu1 %vm271_vm2, %v438_v43  ;;  %v1318_v43 = vrot.slane %v1078_v21, %v7465_v41 }
 0x777   : > { %6408 = vmatprep.mubr.msk.f32.mxu1 %vm7150_vm0, %v7151_v1 }
 0x778   : > { %1320 = vrot.lane.b32.xlu0 %v1318_v43, %s7153_s17 }
 0x7ea   : > { %v1321_v63 = vpop.permute.xlu0 %1320 }
 0x841   : > { %v1069_v39 = vpop.f32.mrb[8].mxu1 }
 0x842   : > { %v1073_v40 = vmul.f32 %v6986_v17, %v1069_v39  ;;  %v6373_v42 = vpop.f32.mrb[9].mxu1 }
 0x844   : > { %v1074_v44 = vsel %vm7422_vm10, %v1073_v40, -1e+30 }
 0x845   : > { %v1075_v45 = vsel %vm680_vm6, %v1074_v44, -inf  ;;  %v1951_v44 = vld [vmem:[#allocation5 + $0x40] sm:$0xff] }
 0x846   : > { %1076 = vmax.xlane.f32.xlu1 %v1075_v45  ;;  %v1952_v45 = vld [vmem:[#allocation5 + $0x48] sm:$0xff] }
 0x847   : > { %v1151_v46 = vpop.f32.mrb[12].mxu0 }
 0x848   : > { %v6378_v47 = vpop.f32.mrb[13].mxu0 }
 0x849   : > { %v1233_v49 = vpop.f32.mrb[10].mxu1 }
 0x84a   : > { %v1234_v50 = vadd.f32 %v1233_v49, %v1151_v46  ;;  %v6389_v51 = vpop.f32.mrb[11].mxu1 }
 0x84b   : > { %v6763_v51 = vpack.c.bf16 %v1952_v45, %v1951_v44 }
 0x857   : > { %1237 = vrot.lane.b32.xlu1 %v1078_v21, %s7152_s15 }
 0x85b   : > { %6921 = vrot.lane.b32.xlu1 %v7352_v14, %s7158_s28 }
 0x85f   : > { %1336 = vrot.lane.b32.xlu1 %v1318_v43, %s7154_s27  ;;  %v1953_v43 = vld [vmem:[#allocation5 + $0x50] sm:$0xff] }
 0x860   : > { %v6766_v55 = vpack.c.bf16 %v1954_v54, %v1953_v43 }
 0x8d3   : > { %v1077_v58 = vpop.xlane.xlu1 %1076 }
 0x8d7   : > { %v1238_v52 = vpop.permute.xlu1 %1237 }
 0x8d8   : > { %6391 = vmatpush3.msk.msra.mxu0 %vm929_vm11, %v1238_v52 }
 0x8d9   : > { %6393 = vmatmul.mubr.msk.f32.vlgmr.msra.gmra.mrb[14].mxu0 %vm926_vm12, %v1077_v58  ;;  %6756 = vmatprep.subr.bf16.mxu0 %v7149_v0 }
 0x8da   : > { %6758 = vmatpush3.bf16.msra.mxu0 %v6757_v59  ;;  %6403 = vmatprep.mubr.msk.f32.mxu0 %vm7150_vm0, %v7151_v1 }
 0x8db   : > { %v6922_v13 = vpop.permute.xlu1 %6921  ;;  %6759 = vmatprep.subr.bf16.mxu0 %v7149_v0 }
 0x8dc   : > { %v6924_v14 = vunpack.i.h.bf16 %v6922_v13  ;;  %v6923_v60 = vunpack.i.l.bf16 %v6922_v13 }
 0x8de   : > { %v6760_v61 = vpack.c.bf16 %v6924_v14, %v6923_v60 }
 0x8df   : > { %v1337_v7 = vpop.permute.xlu1 %1336 }
 0x8e0   : > { %6761 = vmatpush3.bf16.msra.mxu0 %v6760_v61 }
 0x8e1   : > { %6416 = vmatprep.subr.mxu0 %v7151_v1 }
 0x9ac   : > { %v1310_v62 = vpop.f32.mrb[14].mxu0 }
 0x9ad   : > { %v1314_v4 = vadd.f32 %v1310_v62, %v1234_v50  ;;  %v6394_v5 = vpop.f32.mrb[15].mxu0 }
 0x9af   : > { %v7481_v6 = vadd.f32 %v1321_v63, %v1314_v4 }
 0x9b1   : > { %6404 = vmatmul.mubr.msk.f32.vlgmr.msra.gmra.mrb[16].mxu0 %vm271_vm2, %v7481_v6 }
 0x9b2   : > { %6418 = vmatprep.mubr.msk.f32.mxu0 %vm7150_vm0, %v7151_v1 }
 0xa84   : > { %v1408_v8 = vpop.f32.mrb[16].mxu0 }
 0xa85   : > { %v1409_v9 = vadd.f32 %v1408_v8, %v1337_v7  ;;  %v6405_v10 = vpop.f32.mrb[17].mxu0  ;;  %v2183_v7 = vrot.slane %v7533_v38, %v7465_v41  ;;  %v7564_v8 = vpack.i.bf16 %v1954_v54, %v1953_v43 }
 0xa87   : > { %6407 = vmatpush3.xpose.msk.msra.mxu1 %vm527_vm3, %v1409_v9  ;;  %v1485_v11 = vmul.f32 %v1409_v9, %v1409_v9 }
 0xa88   : > { %6411 = vmatprep.subr.mxu1 %v7151_v1 }
 0xa8a   : > { %6409 = vmatmul.mubr.msk.f32.vlgmr.msra.gmra.mrb[12].mxu1 %vm527_vm3, %v1409_v9 }
 0xa8b   : > { %6412 = vmatpush3.msk.msra.mxu1 %vm605_vm4, %v7155_v48  ;;  %6413 = vmatprep.mubr.msk.f32.mxu1 %vm7150_vm0, %v7151_v1 }
 0xa8c   : > { %6421 = vmatprep.subr.mxu1 %v7151_v1 }
 0xa8e   : > { %6414 = vmatmul.mubr.msk.f32.vlgmr.msra.gmra.mrb[14].mxu1 %vm527_vm3, %v1485_v11 }
 0xa8f   : > { %6422 = vmatpush3.msra.mxu1 %v7155_v48  ;;  %6423 = vmatprep.mubr.msk.f32.mxu1 %vm7150_vm0, %v7151_v1 }
 0xa90   : > { %6431 = vmatprep.subr.mxu1 %v7151_v1 }
 0xb5d   : > { %v1481_v12 = vpop.f32.mrb[12].mxu1 }
 0xb5e   : > { %v6410_v15 = vpop.f32.mrb[13].mxu1  ;;  %v1631_v20 = vmul.f32 2.0, %v1481_v12 }
 0xb61   : > { %v1555_v16 = vpop.f32.mrb[14].mxu1 }
 0xb62   : > { %v1559_v17 = vmul.f32 %v7403_v56, %v1555_v16  ;;  %v6415_v18 = vpop.f32.mrb[15].mxu1 }
 0xb64   : > { %6417 = vmatpush3.msra.mxu0 %v1559_v17 }
 0xb65   : > { %6419 = vmatmul.mubr.msk.f32.vlgmr.msra.gmra.mrb[18].mxu0 %vm680_vm6, %v7155_v48  ;;  %6426 = vmatprep.subr.mxu0 %v7151_v1 }
 0xb66   : > { %6428 = vmatprep.mubr.msk.f32.mxu0 %vm7150_vm0, %v7151_v1 }
 0xc38   : > { %v1626_v19 = vpop.f32.mrb[18].mxu0 }
 0xc39   : > { %v1630_v21 = vadd.f32 %v1626_v19, %v1555_v16  ;;  %v6420_v22 = vpop.f32.mrb[19].mxu0 }
 0xc3b   : > { %v1632_v23 = vsub.f32 %v1630_v21, %v1631_v20 }
 0xc3d   : > { %v1633_v24 = vmax.f32 %v1632_v23, 0.0 }
 0xc3f   : > { %v1634_v25 = vsel %vm7396_vm5, 1e+30, %v1633_v24  ;;  %v1648_v31 = vmul.f32 -10.0, %v1633_v24 }
 0xc40   : > { %v1635_v26 = vsel %vm680_vm6, %v1634_v25, inf }
 0xc41   : > { %1636 = vmin.xlane.f32.xlu0 %v1635_v26  ;;  %v1649_v32 = vmul.f32 1.442695, %v1648_v31 }
 0xc43   : > { %6989 = vpow2.f32 %v1649_v32 }
 0xc4d   : > { %v6990_v35 = vpop.eup %6989 }
 0xc57   : > { %1725 = vrot.lane.b32.xlu0 %v1409_v9, %s7156_s22 }
 0xcce   : > { %v1637_v27 = vpop.xlane.xlu0 %1636 }
 0xccf   : > { %vm1638_vm13 = vcmp.le.f32.partialorder %v1634_v25, %v1637_v27 }
 0xcd0   : > { %v1640_v28 = vsel %vm1638_vm13, 1e+30, %v1634_v25  ;;  %vm1639_vm14 = vmor %vm7396_vm5, %vm1638_vm13 }
 0xcd1   : > { %v1641_v29 = vsel %vm680_vm6, %v1640_v28, inf }
 0xcd2   : > { %1642 = vmin.xlane.f32.xlu1 %v1641_v29  ;;  %v1726_v30 = vpop.permute.xlu0 %1725 }
 0xcd3   : > { %6427 = vmatpush3.msra.mxu0 %v1726_v30 }
 0xcd4   : > { %6436 = vmatprep.subr.mxu0 %v7151_v1 }
 0xd5f   : > { %v1643_v33 = vpop.xlane.xlu1 %1642 }
 0xd60   : > { %vm1644_vm15 = vcmp.le.f32.partialorder %v1640_v28, %v1643_v33 }
 0xd61   : > { %vm7514_vm7 = vmor %vm1639_vm14, %vm1644_vm15 }
 0xd62   : > { %v6033_v36 = vsel %vm7514_vm7, 1.0, %v7151_v1 }
 0xd63   : > { %v1724_v37 = vmul.f32 %v6990_v35, %v6033_v36  ;;  %6424 = vmatmul.mubr.msk.f32.vlgmr.msra.gmra.mrb[16].mxu1 %vm680_vm6, %v6033_v36 }
 0xd64   : > { %6432 = vmatpush3.msk.msra.mxu1 %vm929_vm11, %v7155_v48  ;;  %6433 = vmatprep.mubr.msk.f32.mxu1 %vm7150_vm0, %v7151_v1 }
 0xd65   : > { %6429 = vmatmul.mubr.msk.f32.vlgmr.msra.gmra.mrb[20].mxu0 %vm680_vm6, %v1724_v37  ;;  %6441 = vmatprep.subr.mxu1 %v7151_v1 }
 0xd66   : > { %6438 = vmatprep.mubr.msk.f32.mxu0 %vm7150_vm0, %v7151_v1 }
 0xd67   : > { %6434 = vmatmul.mubr.msk.f32.vlgmr.msra.gmra.mrb[18].mxu1 %vm926_vm12, %v1726_v30 }
 0xd68   : > { %6443 = vmatprep.mubr.msk.f32.mxu1 %vm7150_vm0, %v7151_v1  ;;  %6442 = vmatpush3.msk.msra.mxu1 %vm929_vm11, %v7533_v38 }
 0xd69   : > { %6457 = vmatprep.subr.mxu1 %v7151_v1 }
 0xe36   : > { %v1720_v39 = vpop.f32.mrb[16].mxu1 }
 0xe37   : > { %6991 = vrcp.f32 %v1720_v39  ;;  %v6425_v40 = vpop.f32.mrb[17].mxu1 }
 0xe38   : > { %v1797_v42 = vpop.f32.mrb[20].mxu0 }
 0xe39   : > { %v6430_v46 = vpop.f32.mrb[21].mxu0 }
 0xe3a   : > { %v1871_v47 = vpop.f32.mrb[18].mxu1 }
 0xe3b   : > { %v1875_v49 = vmul.f32 %v7403_v56, %v1871_v47  ;;  %v6435_v50 = vpop.f32.mrb[19].mxu1 }
 0xe3d   : > { %6437 = vmatpush3.msra.mxu0 %v1875_v49 }
 0xe3e   : > { %6439 = vmatmul.mubr.msk.f32.vlgmr.msra.gmra.mrb[22].mxu0 %vm680_vm6, %v7155_v48  ;;  %6762 = vmatprep.subr.bf16.mxu0 %v7149_v0 }
 0xe3f   : > { %6764 = vmatpush3.bf16.msra.mxu0 %v6763_v51  ;;  %6454 = vmatprep.mubr.msk.f32.mxu0 %vm7150_vm0, %v7151_v1 }
 0xe40   : > { %6765 = vmatprep.subr.bf16.mxu0 %v7149_v0 }
 0xe41   : > { %v6992_v57 = vpop.eup %6991 }
 0xe42   : > { %v1802_v58 = vmul.f32 %v6992_v57, %v1797_v42 }
 0xe43   : > { %6767 = vmatpush3.bf16.msra.mxu0 %v6766_v55 }
 0xe44   : > { %6444 = vmatmul.mubr.msk.f32.vlgmr.msra.gmra.mrb[20].mxu1 %vm926_vm12, %v1802_v58  ;;  %6473 = vmatprep.subr.mxu0 %v7151_v1 }
 0xe45   : > { %6459 = vmatprep.mubr.msk.f32.mxu1 %vm7150_vm0, %v7151_v1 }
 0xe46   : > { %6455 = vmatmul.mubr.msk.f32.vlgmr.msra.gmra.mrb[24].mxu0 %vm271_vm2, %v7481_v6  ;;  %v7558_v6 = vpack.i.bf16 %v1952_v45, %v1951_v44 }
 0xe47   : > { %6475 = vmatprep.mubr.msk.f32.mxu0 %vm7150_vm0, %v7151_v1 }
 0xe48   : > { %6926 = vrot.lane.b32.xlu0 %v7558_v6, %s7152_s15 }
 0xe4c   : > { %6931 = vrot.lane.b32.xlu0 %v7564_v8, %s7152_s15 }
 0xe50   : > { %2205 = vrot.lane.b32.xlu0 %v2183_v7, %s7154_s27 }
 0xeba   : > { %v6927_v9 = vpop.permute.xlu0 %6926 }
 0xebb   : > { %v6929_v10 = vunpack.i.h.bf16 %v6927_v9  ;;  %v6928_v11 = vunpack.i.l.bf16 %v6927_v9 }
 0xebd   : > { %v6769_v16 = vpack.c.bf16 %v6929_v10, %v6928_v11 }
 0xebe   : > { %v6932_v15 = vpop.permute.xlu0 %6931 }
 0xebf   : > { %v6934_v17 = vunpack.i.h.bf16 %v6932_v15  ;;  %v6933_v18 = vunpack.i.l.bf16 %v6932_v15 }
 0xec1   : > { %v6772_v20 = vpack.c.bf16 %v6934_v17, %v6933_v18 }
 0xec2   : > { %v2206_v26 = vpop.permute.xlu0 %2205 }
 0xf11   : > { %v1942_v59 = vpop.f32.mrb[22].mxu0 }
 0xf12   : > { %v1946_v52 = vmul.f32 %v6990_v35, %v1942_v59  ;;  %v6440_v13 = vpop.f32.mrb[23].mxu0 }
 0xf14   : > { %v1947_v14 = vsel %vm7514_vm7, %v1946_v52, -1e+30 }
 0xf15   : > { %v1948_v60 = vsel %vm680_vm6, %v1947_v14, -inf }
 0xf16   : > { %1949 = vmax.xlane.f32.xlu1 %v1948_v60 }
 0xf17   : > { %v2028_v61 = vpop.f32.mrb[20].mxu1 }
 0xf18   : > { %v6445_v62 = vpop.f32.mrb[21].mxu1 }
 0xf19   : > { %v2098_v63 = vpop.f32.mrb[24].mxu0 }
 0xf1a   : > { %v2099_v4 = vadd.f32 %v2098_v63, %v2028_v61  ;;  %v6456_v5 = vpop.f32.mrb[25].mxu0 }
 0xf27   : > { %2102 = vrot.lane.b32.xlu1 %v7533_v38, %s7152_s15 }
 0xf2b   : > { %2185 = vrot.lane.b32.xlu1 %v2183_v7, %s7153_s17  ;;  %s6117_s17 = sshll.u32 %s7208_s13, 7  ;;  %s7171_s13 = smov [#allocation7]  }
 0xfa3   : > { %v1950_v12 = vpop.xlane.xlu1 %1949 }
 0xfa7   : > { %v2103_v19 = vpop.permute.xlu1 %2102 }
 0xfa8   : > { %6458 = vmatpush3.msk.msra.mxu1 %vm929_vm11, %v2103_v19 }
 0xfa9   : > { %6460 = vmatmul.mubr.msk.f32.vlgmr.msra.gmra.mrb[22].mxu1 %vm926_vm12, %v1950_v12  ;;  %6768 = vmatprep.subr.bf16.mxu1 %v7149_v0 }
 0xfaa   : > { %6770 = vmatpush3.bf16.msra.mxu1 %v6769_v16  ;;  %6470 = vmatprep.mubr.msk.f32.mxu1 %vm7150_vm0, %v7151_v1 }
 0xfab   : > { %6771 = vmatprep.subr.bf16.mxu1 %v7149_v0  ;;  %v2186_v22 = vpop.permute.xlu1 %2185 }
 0xfae   : > { %6773 = vmatpush3.bf16.msra.mxu1 %v6772_v20 }
 0xfaf   : > { %6483 = vmatprep.subr.mxu1 %v7151_v1 }
0x107c   : > { %v2175_v21 = vpop.f32.mrb[22].mxu1 }
0x107d   : > { %v2179_v23 = vadd.f32 %v2175_v21, %v2099_v4  ;;  %v6461_v24 = vpop.f32.mrb[23].mxu1 }
0x107e   : > { %v7650_v24 = vld [vmem:[#allocation5 + $0x68] sm:$0x1] }
0x107f   : > { %v7577_v25 = vadd.f32 %v2186_v22, %v2179_v23 }
0x1081   : > { %6471 = vmatmul.mubr.msk.f32.vlgmr.msra.gmra.mrb[24].mxu1 %vm271_vm2, %v7577_v25 }
0x1082   : > { %6485 = vmatprep.mubr.msk.f32.mxu1 %vm7150_vm0, %v7151_v1 }
0x1154   : > { %v2277_v27 = vpop.f32.mrb[24].mxu1 }
0x1155   : > { %v2278_v28 = vadd.f32 %v2277_v27, %v2206_v26  ;;  %v6472_v29 = vpop.f32.mrb[25].mxu1  ;;  %v7656_v26 = vrot.slane %v7650_v24, %v7465_v41 }
0x1157   : > { %6474 = vmatpush3.xpose.msk.msra.mxu0 %vm527_vm3, %v2278_v28  ;;  %v2354_v30 = vmul.f32 %v2278_v28, %v2278_v28 }
0x1158   : > { %6478 = vmatprep.subr.mxu0 %v7151_v1 }
0x115a   : > { %6476 = vmatmul.mubr.msk.f32.vlgmr.msra.gmra.mrb[26].mxu0 %vm527_vm3, %v2278_v28 }
0x115b   : > { %6479 = vmatpush3.msk.msra.mxu0 %vm605_vm4, %v7155_v48  ;;  %6480 = vmatprep.mubr.msk.f32.mxu0 %vm7150_vm0, %v7151_v1 }
0x115c   : > { %6488 = vmatprep.subr.mxu0 %v7151_v1 }
0x115e   : > { %6481 = vmatmul.mubr.msk.f32.vlgmr.msra.gmra.mrb[28].mxu0 %vm527_vm3, %v2354_v30 }
0x115f   : > { %6489 = vmatpush3.msra.mxu0 %v7155_v48  ;;  %6490 = vmatprep.mubr.msk.f32.mxu0 %vm7150_vm0, %v7151_v1 }
0x1160   : > { %6498 = vmatprep.subr.mxu0 %v7151_v1 }
0x122d   : > { %v2350_v31 = vpop.f32.mrb[26].mxu0 }
0x122e   : > { %v6477_v32 = vpop.f32.mrb[27].mxu0  ;;  %v2500_v37 = vmul.f32 2.0, %v2350_v31 }
0x1231   : > { %v2424_v33 = vpop.f32.mrb[28].mxu0 }
0x1232   : > { %v2428_v34 = vmul.f32 %v7403_v56, %v2424_v33  ;;  %v6482_v35 = vpop.f32.mrb[29].mxu0 }
0x1234   : > { %6484 = vmatpush3.msra.mxu1 %v2428_v34 }
0x1235   : > { %6486 = vmatmul.mubr.msk.f32.vlgmr.msra.gmra.mrb[26].mxu1 %vm680_vm6, %v7155_v48  ;;  %6493 = vmatprep.subr.mxu1 %v7151_v1 }
0x1236   : > { %6495 = vmatprep.mubr.msk.f32.mxu1 %vm7150_vm0, %v7151_v1 }
0x1308   : > { %v2495_v36 = vpop.f32.mrb[26].mxu1 }
0x1309   : > { %v2499_v39 = vadd.f32 %v2495_v36, %v2424_v33  ;;  %v6487_v40 = vpop.f32.mrb[27].mxu1 }
0x130b   : > { %v2501_v42 = vsub.f32 %v2499_v39, %v2500_v37 }
0x130d   : > { %v2502_v44 = vmax.f32 %v2501_v42, 0.0 }
0x130f   : > { %v2503_v45 = vsel %vm7396_vm5, 1e+30, %v2502_v44  ;;  %v2517_v51 = vmul.f32 -10.0, %v2502_v44 }
0x1310   : > { %v2504_v46 = vsel %vm680_vm6, %v2503_v45, inf }
0x1311   : > { %2505 = vmin.xlane.f32.xlu1 %v2504_v46  ;;  %v2518_v43 = vmul.f32 1.442695, %v2517_v51 }
0x1313   : > { %6993 = vpow2.f32 %v2518_v43 }
0x131d   : > { %v6994_v57 = vpop.eup %6993 }
0x1322   : > { %6936 = vrot.lane.b32.xlu1 %v7558_v6, %s7159_s30 }
0x139e   : > { %v2506_v47 = vpop.xlane.xlu1 %2505 }
0x139f   : > { %vm2507_vm8 = vcmp.le.f32.partialorder %v2503_v45, %v2506_v47 }
0x13a0   : > { %v2509_v49 = vsel %vm2507_vm8, 1e+30, %v2503_v45  ;;  %vm2508_vm9 = vmor %vm7396_vm5, %vm2507_vm8 }
0x13a1   : > { %v2510_v50 = vsel %vm680_vm6, %v2509_v49, inf }
0x13a2   : > { %2511 = vmin.xlane.f32.xlu0 %v2510_v50  ;;  %v6937_v13 = vpop.permute.xlu1 %6936 }
0x13a3   : > { %v6939_v61 = vunpack.i.h.bf16 %v6937_v13  ;;  %v6938_v62 = vunpack.i.l.bf16 %v6937_v13 }
0x13a5   : > { %v6775_v7 = vpack.c.bf16 %v6939_v61, %v6938_v62  ;;  %v7009_v62 = vld [vmem:[#allocation5] sm:$0xff] }
0x13b8   : > { %2594 = vrot.lane.b32.xlu0 %v2278_v28, %s7156_s22 }
0x13bc   : > { %6941 = vrot.lane.b32.xlu0 %v7564_v8, %s7159_s30 }
0x142f   : > { %v2512_v54 = vpop.xlane.xlu0 %2511 }
0x1430   : > { %vm2513_vm10 = vcmp.le.f32.partialorder %v2509_v49, %v2512_v54 }
0x1431   : > { %vm7613_vm13 = vmor %vm2508_vm9, %vm2513_vm10 }
0x1432   : > { %v6050_v58 = vsel %vm7613_vm13, 1.0, %v7151_v1 }
0x1433   : > { %v2593_v59 = vmul.f32 %v6994_v57, %v6050_v58  ;;  %v2595_v52 = vpop.permute.xlu0 %2594  ;;  %6491 = vmatmul.mubr.msk.f32.vlgmr.msra.gmra.mrb[30].mxu0 %vm680_vm6, %v6050_v58 }
0x1434   : > { %6494 = vmatpush3.msra.mxu1 %v2595_v52  ;;  %6499 = vmatpush3.msk.msra.mxu0 %vm929_vm11, %v7155_v48 }
0x1435   : > { %6496 = vmatmul.mubr.msk.f32.vlgmr.msra.gmra.mrb[28].mxu1 %vm680_vm6, %v2593_v59  ;;  %6500 = vmatprep.mubr.msk.f32.mxu0 %vm7150_vm0, %v7151_v1 }
0x1436   : > { %6503 = vmatprep.subr.mxu1 %v7151_v1  ;;  %6505 = vmatprep.mubr.msk.f32.mxu1 %vm7150_vm0, %v7151_v1 }
0x1437   : > { %6501 = vmatmul.mubr.msk.f32.vlgmr.msra.gmra.mrb[32].mxu0 %vm926_vm12, %v2595_v52  ;;  %6508 = vmatprep.subr.mxu0 %v7151_v1  ;;  %v6942_v4 = vpop.permute.xlu0 %6941 }
0x1438   : > { %6510 = vmatprep.mubr.msk.f32.mxu0 %vm7150_vm0, %v7151_v1  ;;  %v6944_v10 = vunpack.i.h.bf16 %v6942_v4  ;;  %v6943_v11 = vunpack.i.l.bf16 %v6942_v4 }
0x143a   : > { %v6778_v12 = vpack.c.bf16 %v6944_v10, %v6943_v11 }
0x1506   : > { %v2589_v14 = vpop.f32.mrb[30].mxu0 }
0x1507   : > { %6995 = vrcp.f32 %v2589_v14  ;;  %v6492_v60 = vpop.f32.mrb[31].mxu0 }
0x1508   : > { %v2666_v63 = vpop.f32.mrb[28].mxu1 }
0x1509   : > { %v6497_v5 = vpop.f32.mrb[29].mxu1 }
0x150a   : > { %v2740_v6 = vpop.f32.mrb[32].mxu0 }
0x150b   : > { %v2744_v8 = vmul.f32 %v7403_v56, %v2740_v6  ;;  %v6502_v9 = vpop.f32.mrb[33].mxu0 }
0x150d   : > { %6504 = vmatpush3.msra.mxu1 %v2744_v8 }
0x150e   : > { %6506 = vmatmul.mubr.msk.f32.vlgmr.msra.gmra.mrb[30].mxu1 %vm680_vm6, %v7155_v48  ;;  %6774 = vmatprep.subr.bf16.mxu1 %v7149_v0 }
0x150f   : > { %6776 = vmatpush3.bf16.msra.mxu1 %v6775_v7  ;;  %6521 = vmatprep.mubr.msk.f32.mxu1 %vm7150_vm0, %v7151_v1 }
0x1510   : > { %6777 = vmatprep.subr.bf16.mxu1 %v7149_v0 }
0x1511   : > { %v6996_v15 = vpop.eup %6995 }
0x1512   : > { %v2671_v16 = vmul.f32 %v6996_v15, %v2666_v63  ;;  %v7010_v63 = vld [vmem:[#allocation5 + $0x8] sm:$0xff] }
0x1513   : > { %6779 = vmatpush3.bf16.msra.mxu1 %v6778_v12  ;;  %v7704_v4 = vpack.i.bf16 %v7010_v63, %v7009_v62 }
0x1514   : > { %6536 = vmatprep.subr.mxu1 %v7151_v1 }
0x1516   : > { %6522 = vmatmul.mubr.msk.f32.vlgmr.msra.gmra.mrb[32].mxu1 %vm271_vm2, %v7577_v25  ;;  %v6945_v25 = vpack.i.bf16 %v7337_v3, %v7335_v2 }
0x1517   : > { %6538 = vmatprep.mubr.msk.f32.mxu1 %vm7150_vm0, %v7151_v1 }
0x1518   : > { %6946 = vrot.lane.b32.xlu0 %v6945_v25, %s7152_s15 }
0x151c   : > { %3074 = vrot.lane.b32.xlu0 %v7656_v26, %s7152_s15  ;;  %s7170_s15 = smov 104  }
0x158a   : > { %v6947_v2 = vpop.permute.xlu0 %6946 }
0x158b   : > { %v6949_v3 = vunpack.i.h.bf16 %v6947_v2  ;;  %v6948_v28 = vunpack.i.l.bf16 %v6947_v2 }
0x158d   : > { %v6781_v29 = vpack.c.bf16 %v6949_v3, %v6948_v28 }
0x158e   : > { %v3075_v39 = vpop.permute.xlu0 %3074 }
0x15e1   : > { %v2811_v17 = vpop.f32.mrb[30].mxu1 }
0x15e2   : > { %v2815_v18 = vmul.f32 %v6994_v57, %v2811_v17  ;;  %v6507_v19 = vpop.f32.mrb[31].mxu1 }
0x15e4   : > { %v2816_v20 = vsel %vm7613_vm13, %v2815_v18, -1e+30 }
0x15e5   : > { %v2817_v21 = vsel %vm680_vm6, %v2816_v20, -inf }
0x15e6   : > { %2818 = vmax.xlane.f32.xlu1 %v2817_v21 }
0x15e9   : > { %v2975_v22 = vpop.f32.mrb[32].mxu1 }
0x15ea   : > { %v6523_v23 = vpop.f32.mrb[33].mxu1 }
0x15f7   : > { %2820 = vrot.lane.b32.xlu1 %v7533_v38, %s7158_s28 }
0x15fb   : > { %3062 = vrot.lane.b32.xlu1 %v7656_v26, %s7160_s3 }
0x1673   : > { %v2819_v27 = vpop.xlane.xlu1 %2818 }
0x1677   : > { %v2821_v38 = vpop.permute.xlu1 %2820 }
0x1678   : > { %6509 = vmatpush3.msk.msra.mxu0 %vm929_vm11, %v2821_v38 }
0x1679   : > { %6511 = vmatmul.mubr.msk.f32.vlgmr.msra.gmra.mrb[34].mxu0 %vm926_vm12, %v2671_v16  ;;  %6524 = vmatprep.subr.mxu0 %v7151_v1 }
0x167a   : > { %6525 = vmatpush3.msk.msra.mxu0 %vm929_vm11, %v7650_v24  ;;  %6526 = vmatprep.mubr.msk.f32.mxu0 %vm7150_vm0, %v7151_v1 }
0x167b   : > { %6780 = vmatprep.subr.bf16.mxu0 %v7149_v0  ;;  %v3063_v34 = vpop.permute.xlu1 %3062 }
0x167d   : > { %6527 = vmatmul.mubr.msk.f32.vlgmr.msra.gmra.mrb[36].mxu0 %vm926_vm12, %v2819_v27 }
0x167e   : > { %6533 = vmatprep.mubr.msk.f32.mxu0 %vm7150_vm0, %v7151_v1  ;;  %6782 = vmatpush3.bf16.msra.mxu0 %v6781_v29 }
0x167f   : > { %6541 = vmatprep.subr.mxu0 %v7151_v1 }
0x174c   : > { %v2893_v30 = vpop.f32.mrb[34].mxu0 }
0x174d   : > { %v2976_v31 = vadd.f32 %v2975_v22, %v2893_v30  ;;  %v6512_v32 = vpop.f32.mrb[35].mxu0 }
0x1750   : > { %v3052_v33 = vpop.f32.mrb[36].mxu0 }
0x1751   : > { %v3056_v35 = vadd.f32 %v3052_v33, %v2976_v31  ;;  %v6528_v36 = vpop.f32.mrb[37].mxu0 }
0x1753   : > { %v7675_v37 = vadd.f32 %v3063_v34, %v3056_v35 }
0x1755   : > { %6534 = vmatmul.mubr.msk.f32.vlgmr.msra.gmra.mrb[38].mxu0 %vm189_vm1, %v7675_v37 }
0x1756   : > { %6542 = vmatpush3.msk.msra.mxu0 %vm605_vm4, %v7155_v48  ;;  %6543 = vmatprep.mubr.msk.f32.mxu0 %vm7150_vm0, %v7151_v1 }
0x1757   : > { %6551 = vmatprep.subr.mxu0 %v7151_v1 }
0x1828   : > { %v3146_v40 = vpop.f32.mrb[38].mxu0 }
0x1829   : > { %v3147_v42 = vadd.f32 %v3146_v40, %v3075_v39  ;;  %v6535_v44 = vpop.f32.mrb[39].mxu0 }
0x182b   : > { %v3223_v45 = vmul.f32 %v3147_v42, %v3147_v42  ;;  %6537 = vmatpush3.xpose.msk.msra.mxu1 %vm527_vm3, %v3147_v42 }
0x182c   : > { %6546 = vmatprep.subr.mxu1 %v7151_v1 }
0x182d   : > { %6544 = vmatmul.mubr.msk.f32.vlgmr.msra.gmra.mrb[40].mxu0 %vm527_vm3, %v3223_v45 }
0x182e   : > { %6539 = vmatmul.mubr.msk.f32.vlgmr.msra.gmra.mrb[34].mxu1 %vm527_vm3, %v3147_v42  ;;  %6552 = vmatpush3.msra.mxu0 %v7155_v48 }
0x182f   : > { %6548 = vmatprep.mubr.msk.f32.mxu1 %vm7150_vm0, %v7151_v1  ;;  %6553 = vmatprep.mubr.msk.f32.mxu0 %vm7150_vm0, %v7151_v1 }
0x1830   : > { %6561 = vmatprep.subr.mxu0 %v7151_v1 }
0x1900   : > { %v3293_v46 = vpop.f32.mrb[40].mxu0 }
0x1901   : > { %v3297_v47 = vmul.f32 %v7403_v56, %v3293_v46  ;;  %v3219_v49 = vpop.f32.mrb[34].mxu1  ;;  %v6545_v50 = vpop.f32.mrb[41].mxu0 }
0x1902   : > { %v6540_v51 = vpop.f32.mrb[35].mxu1  ;;  %v3369_v54 = vmul.f32 2.0, %v3219_v49 }
0x1903   : > { %6547 = vmatpush3.msra.mxu1 %v3297_v47 }
0x1904   : > { %6549 = vmatmul.mubr.msk.f32.vlgmr.msra.gmra.mrb[36].mxu1 %vm680_vm6, %v7155_v48  ;;  %6556 = vmatprep.subr.mxu1 %v7151_v1 }
0x1905   : > { %6558 = vmatprep.mubr.msk.f32.mxu1 %vm7150_vm0, %v7151_v1 }
0x19d7   : > { %v3364_v43 = vpop.f32.mrb[36].mxu1 }
0x19d8   : > { %v3368_v55 = vadd.f32 %v3364_v43, %v3293_v46  ;;  %v6550_v57 = vpop.f32.mrb[37].mxu1 }
0x19da   : > { %v3370_v58 = vsub.f32 %v3368_v55, %v3369_v54 }
0x19dc   : > { %v3371_v59 = vmax.f32 %v3370_v58, 0.0 }
0x19de   : > { %v3372_v52 = vsel %vm7396_vm5, 1e+30, %v3371_v59  ;;  %v3386_v5 = vmul.f32 -10.0, %v3371_v59 }
0x19df   : > { %v3373_v13 = vsel %vm680_vm6, %v3372_v52, inf }
0x19e0   : > { %3374 = vmin.xlane.f32.xlu1 %v3373_v13  ;;  %v3387_v6 = vmul.f32 1.442695, %v3386_v5 }
0x19e2   : > { %6997 = vpow2.f32 %v3387_v6 }
0x19ec   : > { %v6998_v9 = vpop.eup %6997 }
0x19f1   : > { %6951 = vrot.lane.b32.xlu1 %v7704_v4, %s7159_s30 }
0x1a6d   : > { %v3375_v14 = vpop.xlane.xlu1 %3374 }
0x1a6e   : > { %vm3376_vm14 = vcmp.le.f32.partialorder %v3372_v52, %v3375_v14 }
0x1a6f   : > { %v3378_v60 = vsel %vm3376_vm14, 1e+30, %v3372_v52  ;;  %vm3377_vm15 = vmor %vm7396_vm5, %vm3376_vm14 }
0x1a70   : > { %v3379_v61 = vsel %vm680_vm6, %v3378_v60, inf }
0x1a71   : > { %3380 = vmin.xlane.f32.xlu0 %v3379_v61  ;;  %v6952_v16 = vpop.permute.xlu1 %6951 }
0x1a72   : > { %v6954_v19 = vunpack.i.h.bf16 %v6952_v16  ;;  %v6953_v20 = vunpack.i.l.bf16 %v6952_v16 }
0x1a74   : > { %v6784_v25 = vpack.c.bf16 %v6954_v19, %v6953_v20 }
0x1a87   : > { %3463 = vrot.lane.b32.xlu0 %v3147_v42, %s7156_s22 }
0x1a8b   : > { %3689 = vrot.lane.b32.xlu0 %v7650_v24, %s7159_s30  ;;  %s7953_s30 = scalar_lea.hbm %s7999_s2, %s6117_s17 }
0x1a8f   : > { %6956 = vrot.lane.b32.xlu0 %v7704_v4, %s7161_s4 }
0x1a93   : > { %3930 = vrot.lane.b32.xlu0 %v7656_v26, %s7162_s5 }
0x1afe   : > { %v3381_v7 = vpop.xlane.xlu0 %3380 }
0x1aff   : > { %vm3382_vm7 = vcmp.le.f32.partialorder %v3378_v60, %v3381_v7 }
0x1b00   : > { %vm7713_vm8 = vmor %vm3377_vm15, %vm3382_vm7 }
0x1b01   : > { %v6067_v10 = vsel %vm7713_vm8, 1.0, %v7151_v1 }
0x1b02   : > { %v3462_v11 = vmul.f32 %v6998_v9, %v6067_v10  ;;  %v3464_v12 = vpop.permute.xlu0 %3463  ;;  %6554 = vmatmul.mubr.msk.f32.vlgmr.msra.gmra.mrb[42].mxu0 %vm680_vm6, %v6067_v10 }
0x1b03   : > { %6557 = vmatpush3.msra.mxu1 %v3464_v12  ;;  %6562 = vmatpush3.msk.msra.mxu0 %vm929_vm11, %v7155_v48 }
0x1b04   : > { %6559 = vmatmul.mubr.msk.f32.vlgmr.msra.gmra.mrb[38].mxu1 %vm680_vm6, %v3462_v11  ;;  %6563 = vmatprep.mubr.msk.f32.mxu0 %vm7150_vm0, %v7151_v1 }
0x1b05   : > { %6566 = vmatprep.subr.mxu1 %v7151_v1  ;;  %6568 = vmatprep.mubr.msk.f32.mxu1 %vm7150_vm0, %v7151_v1 }
0x1b06   : > { %6564 = vmatmul.mubr.msk.f32.vlgmr.msra.gmra.mrb[44].mxu0 %vm926_vm12, %v3464_v12  ;;  %6571 = vmatprep.subr.mxu0 %v7151_v1  ;;  %v3690_v15 = vpop.permute.xlu0 %3689 }
0x1b07   : > { %6573 = vmatprep.mubr.msk.f32.mxu0 %vm7150_vm0, %v7151_v1  ;;  %6572 = vmatpush3.msk.msra.mxu0 %vm929_vm11, %v3690_v15 }
0x1b08   : > { %6583 = vmatprep.subr.mxu0 %v7151_v1 }
0x1b0a   : > { %v6957_v39 = vpop.permute.xlu0 %6956 }
0x1b0b   : > { %v6959_v40 = vunpack.i.h.bf16 %v6957_v39  ;;  %v6958_v42 = vunpack.i.l.bf16 %v6957_v39 }
0x1b0d   : > { %v6787_v44 = vpack.c.bf16 %v6959_v40, %v6958_v42 }
0x1b0e   : > { %v3931_v54 = vpop.permute.xlu0 %3930 }
0x1bd5   : > { %v3458_v17 = vpop.f32.mrb[42].mxu0 }
0x1bd6   : > { %6999 = vrcp.f32 %v3458_v17  ;;  %v6555_v18 = vpop.f32.mrb[43].mxu0 }
0x1bd7   : > { %v3535_v21 = vpop.f32.mrb[38].mxu1 }
0x1bd8   : > { %v6560_v22 = vpop.f32.mrb[39].mxu1 }
0x1bd9   : > { %v3609_v23 = vpop.f32.mrb[44].mxu0 }
0x1bda   : > { %v3613_v27 = vmul.f32 %v7403_v56, %v3609_v23  ;;  %v6565_v38 = vpop.f32.mrb[45].mxu0 }
0x1bdc   : > { %6567 = vmatpush3.msra.mxu1 %v3613_v27 }
0x1bdd   : > { %6569 = vmatmul.mubr.msk.f32.vlgmr.msra.gmra.mrb[40].mxu1 %vm680_vm6, %v7155_v48  ;;  %6783 = vmatprep.subr.bf16.mxu1 %v7149_v0 }
0x1bde   : > { %6785 = vmatpush3.bf16.msra.mxu1 %v6784_v25  ;;  %6580 = vmatprep.mubr.msk.f32.mxu1 %vm7150_vm0, %v7151_v1 }
0x1bdf   : > { %6786 = vmatprep.subr.bf16.mxu1 %v7149_v0 }
0x1be0   : > { %v7000_v2 = vpop.eup %6999 }
0x1be1   : > { %v3540_v3 = vmul.f32 %v7000_v2, %v3535_v21  ;;  %6581 = vmatmul.mubr.msk.f32.vlgmr.msra.gmra.mrb[42].mxu1 %vm189_vm1, %v7675_v37 }
0x1be2   : > { %6592 = vmatprep.mubr.msk.f32.mxu1 %vm7150_vm0, %v7151_v1  ;;  %6788 = vmatpush3.bf16.msra.mxu1 %v6787_v44 }
0x1be3   : > { %6574 = vmatmul.mubr.msk.f32.vlgmr.msra.gmra.mrb[46].mxu0 %vm926_vm12, %v3540_v3  ;;  %6600 = vmatprep.subr.mxu1 %v7151_v1 }
0x1be4   : > { %6585 = vmatprep.mubr.msk.f32.mxu0 %vm7150_vm0, %v7151_v1 }
0x1cb0   : > { %v3680_v28 = vpop.f32.mrb[40].mxu1 }
0x1cb1   : > { %v3684_v29 = vmul.f32 %v6998_v9, %v3680_v28  ;;  %v6570_v30 = vpop.f32.mrb[41].mxu1 }
0x1cb3   : > { %v3685_v31 = vsel %vm7713_vm8, %v3684_v29, -1e+30 }
0x1cb4   : > { %v3838_v32 = vpop.f32.mrb[42].mxu1  ;;  %v3686_v33 = vsel %vm680_vm6, %v3685_v31, -inf }
0x1cb5   : > { %3687 = vmax.xlane.f32.xlu1 %v3686_v33  ;;  %v6582_v34 = vpop.f32.mrb[43].mxu1 }
0x1cb6   : > { %v3762_v35 = vpop.f32.mrb[46].mxu0 }
0x1cb7   : > { %v3839_v36 = vadd.f32 %v3838_v32, %v3762_v35  ;;  %v6575_v37 = vpop.f32.mrb[47].mxu0 }
0x1cc6   : > { %3842 = vrot.lane.b32.xlu1 %v7650_v24, %s7161_s4 }
0x1cca   : > { %3920 = vrot.lane.b32.xlu1 %v7656_v26, %s7157_s23 }
0x1d42   : > { %v3688_v45 = vpop.xlane.xlu1 %3687 }
0x1d46   : > { %v3843_v46 = vpop.permute.xlu1 %3842 }
0x1d47   : > { %6584 = vmatpush3.msk.msra.mxu0 %vm929_vm11, %v3843_v46 }
0x1d48   : > { %6586 = vmatmul.mubr.msk.f32.vlgmr.msra.gmra.mrb[48].mxu0 %vm926_vm12, %v3688_v45  ;;  %6595 = vmatprep.subr.mxu0 %v7151_v1 }
0x1d49   : > { %6597 = vmatprep.mubr.msk.f32.mxu0 %vm7150_vm0, %v7151_v1 }
0x1d4a   : > { %v3921_v49 = vpop.permute.xlu1 %3920 }
0x1e1b   : > { %v3915_v47 = vpop.f32.mrb[48].mxu0 }
0x1e1c   : > { %v3919_v50 = vadd.f32 %v3915_v47, %v3839_v36  ;;  %v6587_v51 = vpop.f32.mrb[49].mxu0 }
0x1e1e   : > { %v7766_v43 = vadd.f32 %v3921_v49, %v3919_v50  ;;  %v7843_v50 = vld [vmem:[#allocation5 + $0x68] sm:$0xff] }
0x1e20   : > { %6593 = vmatmul.mubr.msk.f32.vlgmr.msra.gmra.mrb[44].mxu1 %vm189_vm1, %v7766_v43 }
0x1e21   : > { %6601 = vmatpush3.msk.msra.mxu1 %vm605_vm4, %v7155_v48  ;;  %6602 = vmatprep.mubr.msk.f32.mxu1 %vm7150_vm0, %v7151_v1 }
0x1e22   : > { %6610 = vmatprep.subr.mxu1 %v7151_v1 }
0x1ef3   : > { %v4002_v55 = vpop.f32.mrb[44].mxu1 }
0x1ef4   : > { %v4003_v57 = vadd.f32 %v4002_v55, %v3931_v54  ;;  %v6594_v58 = vpop.f32.mrb[45].mxu1 }
0x1ef6   : > { %v4079_v59 = vmul.f32 %v4003_v57, %v4003_v57  ;;  %6596 = vmatpush3.xpose.msk.msra.mxu0 %vm527_vm3, %v4003_v57 }
0x1ef7   : > { %6605 = vmatprep.subr.mxu0 %v7151_v1 }
0x1ef8   : > { %6603 = vmatmul.mubr.msk.f32.vlgmr.msra.gmra.mrb[46].mxu1 %vm527_vm3, %v4079_v59 }
0x1ef9   : > { %6598 = vmatmul.mubr.msk.f32.vlgmr.msra.gmra.mrb[50].mxu0 %vm527_vm3, %v4003_v57  ;;  %6611 = vmatpush3.msra.mxu1 %v7155_v48 }
0x1efa   : > { %6607 = vmatprep.mubr.msk.f32.mxu0 %vm7150_vm0, %v7151_v1  ;;  %6612 = vmatprep.mubr.msk.f32.mxu1 %vm7150_vm0, %v7151_v1 }
0x1efb   : > { %6620 = vmatprep.subr.mxu1 %v7151_v1 }
0x1fcb   : > { %v4149_v52 = vpop.f32.mrb[46].mxu1 }
0x1fcc   : > { %v4153_v13 = vmul.f32 %v7403_v56, %v4149_v52  ;;  %v4075_v14 = vpop.f32.mrb[50].mxu0  ;;  %v6604_v60 = vpop.f32.mrb[47].mxu1 }
0x1fcd   : > { %v6599_v61 = vpop.f32.mrb[51].mxu0  ;;  %v4225_v63 = vmul.f32 2.0, %v4075_v14 }
0x1fce   : > { %6606 = vmatpush3.msra.mxu0 %v4153_v13 }
0x1fcf   : > { %6608 = vmatmul.mubr.msk.f32.vlgmr.msra.gmra.mrb[52].mxu0 %vm680_vm6, %v7155_v48  ;;  %6615 = vmatprep.subr.mxu0 %v7151_v1 }
0x1fd0   : > { %6617 = vmatprep.mubr.msk.f32.mxu0 %vm7150_vm0, %v7151_v1 }
0x20a2   : > { %v4220_v62 = vpop.f32.mrb[52].mxu0 }
0x20a3   : > { %v4224_v5 = vadd.f32 %v4220_v62, %v4149_v52  ;;  %v6609_v6 = vpop.f32.mrb[53].mxu0 }
0x20a5   : > { %v4226_v7 = vsub.f32 %v4224_v5, %v4225_v63 }
0x20a7   : > { %v4227_v8 = vmax.f32 %v4226_v7, 0.0 }
0x20a9   : > { %v4228_v9 = vsel %vm7396_vm5, 1e+30, %v4227_v8  ;;  %v4242_v16 = vmul.f32 -10.0, %v4227_v8 }
0x20aa   : > { %v4229_v10 = vsel %vm680_vm6, %v4228_v9, inf }
0x20ab   : > { %4230 = vmin.xlane.f32.xlu1 %v4229_v10  ;;  %v4243_v17 = vmul.f32 1.442695, %v4242_v16 }
0x20ad   : > { %7001 = vpow2.f32 %v4243_v17 }
0x20b7   : > { %v7002_v20 = vpop.eup %7001 }
0x20bc   : > { %6961 = vrot.lane.b32.xlu1 %v7704_v4, %s7163_s6 }
0x2138   : > { %v4231_v11 = vpop.xlane.xlu1 %4230 }
0x2139   : > { %vm4232_vm9 = vcmp.le.f32.partialorder %v4228_v9, %v4231_v11 }
0x213a   : > { %v4234_v12 = vsel %vm4232_vm9, 1e+30, %v4228_v9  ;;  %vm4233_vm10 = vmor %vm7396_vm5, %vm4232_vm9 }
0x213b   : > { %v4235_v15 = vsel %vm680_vm6, %v4234_v12, inf }
0x213c   : > { %4236 = vmin.xlane.f32.xlu0 %v4235_v15  ;;  %v6962_v25 = vpop.permute.xlu1 %6961 }
0x213d   : > { %v6964_v2 = vunpack.i.h.bf16 %v6962_v25  ;;  %v6963_v3 = vunpack.i.l.bf16 %v6962_v25 }
0x213f   : > { %v6790_v32 = vpack.c.bf16 %v6964_v2, %v6963_v3 }
0x2152   : > { %4319 = vrot.lane.b32.xlu0 %v4003_v57, %s7156_s22 }
0x2156   : > { %4545 = vrot.lane.b32.xlu0 %v7650_v24, %s7164_s7 }
0x215a   : > { %4776 = vrot.lane.b32.xlu0 %v7656_v26, %s7165_s18 }
0x215e   : > { %4785 = vrot.lane.b32.xlu0 %v7656_v26, %s7167_s25 }
0x21c9   : > { %v4237_v18 = vpop.xlane.xlu0 %4236 }
0x21ca   : > { %vm4238_vm13 = vcmp.le.f32.partialorder %v4234_v12, %v4237_v18 }
0x21cb   : > { %vm7802_vm14 = vmor %vm4233_vm10, %vm4238_vm13 }
0x21cc   : > { %v6084_v4 = vsel %vm7802_vm14, 1.0, %v7151_v1 }
0x21cd   : > { %v4318_v21 = vmul.f32 %v7002_v20, %v6084_v4  ;;  %v4320_v22 = vpop.permute.xlu0 %4319  ;;  %6613 = vmatmul.mubr.msk.f32.vlgmr.msra.gmra.mrb[48].mxu1 %vm680_vm6, %v6084_v4 }
0x21ce   : > { %6616 = vmatpush3.msra.mxu0 %v4320_v22  ;;  %6621 = vmatpush3.msk.msra.mxu1 %vm929_vm11, %v7155_v48 }
0x21cf   : > { %6618 = vmatmul.mubr.msk.f32.vlgmr.msra.gmra.mrb[54].mxu0 %vm680_vm6, %v4318_v21  ;;  %6622 = vmatprep.mubr.msk.f32.mxu1 %vm7150_vm0, %v7151_v1 }
0x21d0   : > { %6625 = vmatprep.subr.mxu0 %v7151_v1  ;;  %6627 = vmatprep.mubr.msk.f32.mxu0 %vm7150_vm0, %v7151_v1 }
0x21d1   : > { %6623 = vmatmul.mubr.msk.f32.vlgmr.msra.gmra.mrb[50].mxu1 %vm926_vm12, %v4320_v22  ;;  %6630 = vmatprep.subr.mxu1 %v7151_v1  ;;  %v4546_v23 = vpop.permute.xlu0 %4545 }
0x21d2   : > { %6632 = vmatprep.mubr.msk.f32.mxu1 %vm7150_vm0, %v7151_v1  ;;  %6631 = vmatpush3.msk.msra.mxu1 %vm929_vm11, %v4546_v23 }
0x21d3   : > { %6642 = vmatprep.subr.mxu1 %v7151_v1 }
0x21d5   : > { %v4777_v55 = vpop.permute.xlu0 %4776 }
0x21d9   : > { %v4786_v52 = vpop.permute.xlu0 %4785 }
0x22a0   : > { %v4314_v27 = vpop.f32.mrb[48].mxu1 }
0x22a1   : > { %7003 = vrcp.f32 %v4314_v27  ;;  %v6614_v38 = vpop.f32.mrb[49].mxu1 }
0x22a2   : > { %v4391_v28 = vpop.f32.mrb[54].mxu0 }
0x22a3   : > { %v6619_v29 = vpop.f32.mrb[55].mxu0 }
0x22a4   : > { %v4465_v30 = vpop.f32.mrb[50].mxu1 }
0x22a5   : > { %v4469_v31 = vmul.f32 %v7403_v56, %v4465_v30  ;;  %v6624_v33 = vpop.f32.mrb[51].mxu1 }
0x22a7   : > { %6626 = vmatpush3.msra.mxu0 %v4469_v31 }
0x22a8   : > { %6628 = vmatmul.mubr.msk.f32.vlgmr.msra.gmra.mrb[56].mxu0 %vm680_vm6, %v7155_v48  ;;  %6789 = vmatprep.subr.bf16.mxu0 %v7149_v0 }
0x22a9   : > { %6791 = vmatpush3.bf16.msra.mxu0 %v6790_v32  ;;  %6639 = vmatprep.mubr.msk.f32.mxu0 %vm7150_vm0, %v7151_v1 }
0x22aa   : > { %6647 = vmatprep.subr.mxu0 %v7151_v1 }
0x22ab   : > { %v7004_v34 = vpop.eup %7003 }
0x22ac   : > { %v4396_v35 = vmul.f32 %v7004_v34, %v4391_v28  ;;  %6640 = vmatmul.mubr.msk.f32.vlgmr.msra.gmra.mrb[58].mxu0 %vm189_vm1, %v7766_v43 }
0x22ad   : > { %6649 = vmatprep.mubr.msk.f32.mxu0 %vm7150_vm0, %v7151_v1 }
0x22ae   : > { %6633 = vmatmul.mubr.msk.f32.vlgmr.msra.gmra.mrb[52].mxu1 %vm926_vm12, %v4396_v35 }
0x22af   : > { %6644 = vmatprep.mubr.msk.f32.mxu1 %vm7150_vm0, %v7151_v1 }
0x237b   : > { %v4536_v36 = vpop.f32.mrb[56].mxu0 }
0x237c   : > { %v4540_v37 = vmul.f32 %v7002_v20, %v4536_v36  ;;  %v6629_v39 = vpop.f32.mrb[57].mxu0 }
0x237e   : > { %v4541_v40 = vsel %vm7802_vm14, %v4540_v37, -1e+30 }
0x237f   : > { %v4694_v42 = vpop.f32.mrb[58].mxu0  ;;  %v4542_v44 = vsel %vm680_vm6, %v4541_v40, -inf }
0x2380   : > { %4543 = vmax.xlane.f32.xlu1 %v4542_v44  ;;  %v6641_v45 = vpop.f32.mrb[59].mxu0  ;;  %v5631_v44 = vrot.slane %v5400_v53, %v7465_v41 }
0x2381   : > { %v4618_v46 = vpop.f32.mrb[52].mxu1  ;;  %v5637_v45 = vld [vmem:[#allocation5 + $0x70] sm:$0xff] }
0x2382   : > { %v4695_v47 = vadd.f32 %v4694_v42, %v4618_v46  ;;  %v6634_v49 = vpop.f32.mrb[53].mxu1 }
0x2383   : > { %v7011_v49 = vld [vmem:[#allocation5 + $0x40] sm:$0xff] }
0x2391   : > { %4698 = vrot.lane.b32.xlu1 %v7650_v24, %s7154_s27  ;;  %s173_s27 = scalar_lea.vmem [#allocation7], %s6002_s26  ;;  %s7077_s26 = sshll.u32 %s7171_s13, 4  ;;  %s7078_s26 = int_to_ptr.vmem [resolvable:$false] %s7077_s26 }
0x2395   : > { %4782 = vrot.lane.b32.xlu1 %v7843_v50, %s7166_s24 }
0x240d   : > { %v4544_v51 = vpop.xlane.xlu1 %4543 }
0x2411   : > { %v4699_v43 = vpop.permute.xlu1 %4698 }
0x2412   : > { %6643 = vmatpush3.msk.msra.mxu1 %vm929_vm11, %v4699_v43  ;;  %v7013_v43 = vld [vmem:[#allocation5 + $0x50] sm:$0xff] }
0x2413   : > { %6645 = vmatmul.mubr.msk.f32.vlgmr.msra.gmra.mrb[54].mxu1 %vm926_vm12, %v4544_v51  ;;  %6652 = vmatprep.subr.mxu1 %v7151_v1 }
0x2414   : > { %6654 = vmatprep.mubr.msk.f32.mxu1 %vm7150_vm0, %v7151_v1 }
0x2415   : > { %v4783_v24 = vpop.permute.xlu1 %4782 }
0x2416   : > { %6648 = vmatpush3.msra.mxu0 %v4783_v24  ;;  %v7014_v24 = vld [vmem:[#allocation5 + $0x58] sm:$0xff] }
0x2417   : > { %6657 = vmatprep.subr.mxu0 %v7151_v1 }
0x24e6   : > { %v4771_v54 = vpop.f32.mrb[54].mxu1 }
0x24e7   : > { %v4775_v57 = vadd.f32 %v4771_v54, %v4695_v47  ;;  %v6646_v58 = vpop.f32.mrb[55].mxu1  ;;  %v6970_v54 = vpack.i.bf16 %v7014_v24, %v7013_v43 }
0x24e9   : > { %v7854_v59 = vadd.f32 %v4777_v55, %v4775_v57 }
0x24eb   : > { %6650 = vmatmul.mubr.msk.f32.vlgmr.msra.gmra.mrb[60].mxu0 %vm680_vm6, %v7854_v59 }
0x24ec   : > { %6658 = vmatpush3.msk.msra.mxu0 %vm605_vm4, %v7155_v48  ;;  %6659 = vmatprep.mubr.msk.f32.mxu0 %vm7150_vm0, %v7151_v1 }
0x24ed   : > { %6667 = vmatprep.subr.mxu0 %v7151_v1 }
0x25be   : > { %v4857_v13 = vpop.f32.mrb[60].mxu0 }
0x25bf   : > { %v4858_v26 = vadd.f32 %v4857_v13, %v4786_v52  ;;  %v6651_v14 = vpop.f32.mrb[61].mxu0 }
0x25c1   : > { %v4934_v60 = vmul.f32 %v4858_v26, %v4858_v26  ;;  %6653 = vmatpush3.xpose.msk.msra.mxu1 %vm527_vm3, %v4858_v26 }
0x25c2   : > { %6662 = vmatprep.subr.mxu1 %v7151_v1 }
0x25c3   : > { %6660 = vmatmul.mubr.msk.f32.vlgmr.msra.gmra.mrb[62].mxu0 %vm527_vm3, %v4934_v60 }
0x25c4   : > { %6655 = vmatmul.mubr.msk.f32.vlgmr.msra.gmra.mrb[56].mxu1 %vm527_vm3, %v4858_v26  ;;  %6668 = vmatpush3.msra.mxu0 %v7155_v48 }
0x25c5   : > { %6664 = vmatprep.mubr.msk.f32.mxu1 %vm7150_vm0, %v7151_v1  ;;  %6669 = vmatprep.mubr.msk.f32.mxu0 %vm7150_vm0, %v7151_v1 }
0x25c6   : > { %6677 = vmatprep.subr.mxu0 %v7151_v1 }
0x2696   : > { %v5004_v61 = vpop.f32.mrb[62].mxu0 }
0x2697   : > { %v5008_v62 = vmul.f32 %v7403_v56, %v5004_v61  ;;  %v4930_v63 = vpop.f32.mrb[56].mxu1  ;;  %v6661_v5 = vpop.f32.mrb[63].mxu0 }
0x2698   : > { %v6656_v6 = vpop.f32.mrb[57].mxu1  ;;  %v5080_v8 = vmul.f32 2.0, %v4930_v63 }
0x2699   : > { %6663 = vmatpush3.msra.mxu1 %v5008_v62 }
0x269a   : > { %6665 = vmatmul.mubr.msk.f32.vlgmr.msra.gmra.mrb[58].mxu1 %vm680_vm6, %v7155_v48  ;;  %6672 = vmatprep.subr.mxu1 %v7151_v1 }
0x269b   : > { %6674 = vmatprep.mubr.msk.f32.mxu1 %vm7150_vm0, %v7151_v1 }
0x276d   : > { %v5075_v7 = vpop.f32.mrb[58].mxu1 }
0x276e   : > { %v5079_v9 = vadd.f32 %v5075_v7, %v5004_v61  ;;  %v6666_v10 = vpop.f32.mrb[59].mxu1 }
0x2770   : > { %v5081_v11 = vsub.f32 %v5079_v9, %v5080_v8 }
0x2772   : > { %v5082_v12 = vmax.f32 %v5081_v11, 0.0 }
0x2774   : > { %v5083_v15 = vsel %vm7396_vm5, 1e+30, %v5082_v12  ;;  %v5097_v20 = vmul.f32 -10.0, %v5082_v12 }
0x2775   : > { %v5084_v16 = vsel %vm680_vm6, %v5083_v15, inf }
0x2776   : > { %5085 = vmin.xlane.f32.xlu1 %v5084_v16  ;;  %v5098_v4 = vmul.f32 1.442695, %v5097_v20 }
0x2778   : > { %7005 = vpow2.f32 %v5098_v4 }
0x2782   : > { %v7006_v23 = vpop.eup %7005 }
0x2803   : > { %v5086_v17 = vpop.xlane.xlu1 %5085 }
0x2804   : > { %vm5087_vm1 = vcmp.le.f32.partialorder %v5083_v15, %v5086_v17 }
0x2805   : > { %v5089_v18 = vsel %vm5087_vm1, 1e+30, %v5083_v15  ;;  %vm5088_vm3 = vmor %vm7396_vm5, %vm5087_vm1 }
0x2806   : > { %v5090_v19 = vsel %vm680_vm6, %v5089_v18, inf }
0x2807   : > { %5091 = vmin.xlane.f32.xlu0 %v5090_v19 }
0x281d   : > { %5174 = vrot.lane.b32.xlu0 %v4858_v26, %s7156_s22  ;;  %s5915_s22 = sshll.u32 %s173_s27, 4  ;;  %s7955_s22 = int_to_ptr.vmem [resolvable:$true] %s5915_s22 }
0x281e   : > { %p7080_p8 = scmp.lt.s32.totalorder %s7955_s22, %s7078_s26 }
0x2821   : > { %5550 = vrot.lane.b32.xlu0 %v5400_v53, %s7168_s19 }
0x2825   : > { %5639 = vrot.lane.b32.xlu0 %v5637_v45, %s7170_s15 }
0x2829   : > { %6971 = vrot.lane.b32.xlu0 %v6970_v54, %s7161_s4 }
0x2894   : > { %v5092_v21 = vpop.xlane.xlu0 %5091 }
0x2895   : > { %vm5093_vm4 = vcmp.le.f32.partialorder %v5089_v18, %v5092_v21 }
0x2896   : > { %vm7886_vm15 = vmor %vm5088_vm3, %vm5093_vm4 }
0x2897   : > { %v6101_v25 = vsel %vm7886_vm15, 1.0, %v7151_v1 }
0x2898   : > { %v5173_v27 = vmul.f32 %v7006_v23, %v6101_v25  ;;  %v5175_v38 = vpop.permute.xlu0 %5174  ;;  %6670 = vmatmul.mubr.msk.f32.vlgmr.msra.gmra.mrb[64].mxu0 %vm680_vm6, %v6101_v25 }
0x2899   : > { %6673 = vmatpush3.msra.mxu1 %v5175_v38  ;;  %6678 = vmatpush3.msk.msra.mxu0 %vm929_vm11, %v7155_v48 }
0x289a   : > { %6675 = vmatmul.mubr.msk.f32.vlgmr.msra.gmra.mrb[60].mxu1 %vm680_vm6, %v5173_v27  ;;  %6679 = vmatprep.mubr.msk.f32.mxu0 %vm7150_vm0, %v7151_v1 }
0x289b   : > { %6682 = vmatprep.subr.mxu1 %v7151_v1  ;;  %6684 = vmatprep.mubr.msk.f32.mxu1 %vm7150_vm0, %v7151_v1 }
0x289c   : > { %6680 = vmatmul.mubr.msk.f32.vlgmr.msra.gmra.mrb[66].mxu0 %vm926_vm12, %v5175_v38  ;;  %6687 = vmatprep.subr.mxu0 %v7151_v1 }
0x289d   : > { %6689 = vmatprep.mubr.msk.f32.mxu0 %vm7150_vm0, %v7151_v1  ;;  %6688 = vmatpush3.msk.msra.mxu0 %vm929_vm11, %v5400_v53  ;;  %v6114_v53 = vld [vmem:[#allocation5 + $0x78] ss:$0 sm:$0xff] }
0x289e   : > { %6697 = vmatprep.subr.mxu0 %v7151_v1 }
0x296b   : > { %v5169_v2 = vpop.f32.mrb[64].mxu0 }
0x296c   : > { %7007 = vrcp.f32 %v5169_v2  ;;  %v6671_v3 = vpop.f32.mrb[65].mxu0 }
0x296d   : > { %v5246_v28 = vpop.f32.mrb[60].mxu1 }
0x296e   : > { %v6676_v29 = vpop.f32.mrb[61].mxu1 }
0x296f   : > { %v5320_v30 = vpop.f32.mrb[66].mxu0 }
0x2970   : > { %v5324_v31 = vmul.f32 %v7403_v56, %v5320_v30  ;;  %v6681_v32 = vpop.f32.mrb[67].mxu0  ;;  %v5551_v56 = vpop.permute.xlu0 %5550 }
0x2972   : > { %6683 = vmatpush3.msra.mxu1 %v5324_v31 }
0x2973   : > { %6685 = vmatmul.mubr.msk.f32.vlgmr.msra.gmra.mrb[62].mxu1 %vm680_vm6, %v7155_v48  ;;  %6692 = vmatprep.subr.mxu1 %v7151_v1 }
0x2974   : > { %6694 = vmatprep.mubr.msk.f32.mxu1 %vm7150_vm0, %v7151_v1  ;;  %v5640_v41 = vpop.permute.xlu0 %5639 }
0x2976   : > { %v7008_v33 = vpop.eup %7007 }
0x2977   : > { %v5251_v34 = vmul.f32 %v7008_v33, %v5246_v28 }
0x2978   : > { %v6972_v26 = vpop.permute.xlu0 %6971 }
0x2979   : > { %6690 = vmatmul.mubr.msk.f32.vlgmr.msra.gmra.mrb[68].mxu0 %vm926_vm12, %v5251_v34  ;;  %v6974_v14 = vunpack.i.h.bf16 %v6972_v26  ;;  %v6973_v60 = vunpack.i.l.bf16 %v6972_v26 }
0x297a   : > { %6699 = vmatprep.mubr.msk.f32.mxu0 %vm7150_vm0, %v7151_v1  ;;  %6698 = vmatpush3.msk.msra.mxu0 %vm929_vm11, %v5551_v56 }
0x297b   : > { %6792 = vmatprep.subr.bf16.mxu0 %v7149_v0  ;;  %v6796_v63 = vpack.c.bf16 %v6974_v14, %v6973_v60 }
0x2a46   : > { %v5391_v48 = vpop.f32.mrb[62].mxu1 }
0x2a47   : > { %v5395_v35 = vmul.f32 %v7006_v23, %v5391_v48  ;;  %v6686_v36 = vpop.f32.mrb[63].mxu1 }
0x2a49   : > { %v5396_v37 = vsel %vm7886_vm15, %v5395_v35, -1e+30 }
0x2a4a   : > { %v5397_v39 = vsel %vm680_vm6, %v5396_v37, -inf }
0x2a4b   : > { %5398 = vmax.xlane.f32.xlu1 %v5397_v39 }
0x2a4c   : > { %v5473_v40 = vpop.f32.mrb[68].mxu0 }
0x2a4d   : > { %v6691_v42 = vpop.f32.mrb[69].mxu0 }
0x2a5c   : > { %5477 = vrot.lane.b32.xlu1 %v7843_v50, %s7169_s29  ;;  %v7012_v50 = vld [vmem:[#allocation5 + $0x48] sm:$0xff] }
0x2a5d   : > { %v6965_v51 = vpack.i.bf16 %v7012_v50, %v7011_v49 }
0x2a5f   : > { %6976 = vrot.lane.b32.xlu0 %v6965_v51, %s7162_s5 }
0x2a60   : > { %5633 = vrot.lane.b32.xlu1 %v5631_v44, %s7160_s3  ;;  %s5902_s3 = scalar_lea.sflag [#allocation4], %s7315_s20 }
0x2a63   : > { %5731 = vrot.lane.b32.xlu0 %v5631_v44, %s7164_s7 }
0x2a64   : > { %6966 = vrot.lane.b32.xlu1 %v6965_v51, %s7161_s4  ;;  %s7073_s4 = scalar_lea.vmem %s7955_s22, 128 }
0x2a65   : > { %p7074_p1 = scmp.ne.s32.totalorder %s7955_s22, %s7073_s4 }
0x2a67   : > { %p7075_p4 = pnand %p7074_p1, %p7270_p12 }
0x2a68   : > { %5642 = vrot.lane.b32.xlu1 %v5631_v44, %s7163_s6 }
0x2a69   : > { %p7076_p6 = pneg %p7075_p4 }
0x2a6c   : > { %6981 = vrot.lane.b32.xlu1 %v6970_v54, %s7162_s5  ;;  %s7079_s5 = scalar_lea.vmem %s7078_s26, 256 }
0x2a6d   : > { %p7081_p13 = scmp.lt.s32.totalorder %s7079_s5, %s7073_s4 }
0x2a6f   : > { %p7082_p3 = por %p7081_p13, %p7080_p8 }
0x2a71   : > { %p7083_p7 = pnand %p7082_p3, %p7076_p6 }
0x2ad1   : > { %v6977_v10 = vpop.permute.xlu0 %6976 }
0x2ad2   : > { %v6979_v12 = vunpack.i.h.bf16 %v6977_v10  ;;  %v6978_v15 = vunpack.i.l.bf16 %v6977_v10 }
0x2ad4   : > { %v6799_v18 = vpack.c.bf16 %v6979_v12, %v6978_v15 }
0x2ad5   : > { %v5732_v22 = vpop.permute.xlu0 %5731 }
0x2ad8   : > { %v5399_v46 = vpop.xlane.xlu1 %5398 }
0x2ad9   : > { %6700 = vmatmul.mubr.msk.f32.vlgmr.msra.gmra.mrb[70].mxu0 %vm926_vm12, %v5399_v46 }
0x2ada   : > { %6715 = vmatprep.mubr.msk.f32.mxu0 %vm7150_vm0, %v7151_v1 }
0x2adc   : > { %v5478_v47 = vpop.permute.xlu1 %5477 }
0x2add   : > { %6693 = vmatpush3.msra.mxu1 %v5478_v47 }
0x2ade   : > { %6695 = vmatmul.mubr.msk.f32.vlgmr.msra.gmra.mrb[64].mxu1 %vm680_vm6, %v7854_v59  ;;  %6702 = vmatprep.subr.mxu1 %v7151_v1 }
0x2adf   : > { %6704 = vmatprep.mubr.msk.f32.mxu1 %vm7150_vm0, %v7151_v1  ;;  %6703 = vmatpush3.msra.mxu1 %v5640_v41 }
0x2ae0   : > { %6798 = vmatprep.subr.bf16.mxu1 %v7149_v0  ;;  %v5634_v55 = vpop.permute.xlu1 %5633 }
0x2ae4   : > { %v6967_v58 = vpop.permute.xlu1 %6966 }
0x2ae5   : > { %v6969_v52 = vunpack.i.h.bf16 %v6967_v58  ;;  %v6968_v13 = vunpack.i.l.bf16 %v6967_v58 }
0x2ae7   : > { %v6793_v61 = vpack.c.bf16 %v6969_v52, %v6968_v13 }
0x2ae8   : > { %v5643_v9 = vpop.permute.xlu1 %5642 }
0x2ae9   : > { %6794 = vmatpush3.bf16.msra.mxu0 %v6793_v61 }
0x2aea   : > { %6795 = vmatprep.subr.bf16.mxu0 %v7149_v0 }
0x2aec   : > { %v6982_v11 = vpop.permute.xlu1 %6981 }
0x2aed   : > { %6797 = vmatpush3.bf16.msra.mxu0 %v6796_v63  ;;  %v6984_v16 = vunpack.i.h.bf16 %v6982_v11  ;;  %v6983_v17 = vunpack.i.l.bf16 %v6982_v11 }
0x2aef   : > { %v6802_v19 = vpack.c.bf16 %v6984_v16, %v6983_v17 }
0x2bac   : > { %v5623_v57 = vpop.f32.mrb[70].mxu0 }
0x2bad   : > { %v6701_v59 = vpop.f32.mrb[71].mxu0 }
0x2bb1   : > { %v5546_v62 = vpop.f32.mrb[64].mxu1 }
0x2bb2   : > { %v5547_v5 = vadd.f32 %v5546_v62, %v5473_v40  ;;  %v6696_v6 = vpop.f32.mrb[65].mxu1 }
0x2bb4   : > { %v5627_v7 = vadd.f32 %v5623_v57, %v5547_v5 }
0x2bb6   : > { %v5636_v8 = vadd.f32 %v5634_v55, %v5627_v7 }
0x2bb8   : > { %6705 = vmatmul.mubr.msk.f32.vlgmr.msra.gmra.mrb[66].mxu1 %vm680_vm6, %v5636_v8 }
0x2bb9   : > { %6726 = vmatprep.mubr.msk.f32.mxu1 %vm7150_vm0, %v7151_v1  ;;  %6800 = vmatpush3.bf16.msra.mxu1 %v6799_v18 }
0x2bba   : > { %6801 = vmatprep.subr.bf16.mxu1 %v7149_v0 }
0x2bbd   : > { %6803 = vmatpush3.bf16.msra.mxu1 %v6802_v19 }
0x2c8b   : > { %v5714_v20 = vpop.f32.mrb[66].mxu1 }
0x2c8c   : > { %v5715_v1 = vadd.f32 %v5714_v20, %v5643_v9  ;;  %v6706_v4 = vpop.f32.mrb[67].mxu1 }
0x2c8e   : > { %v5718_v21 = vmax.f32 %v5715_v1, 0.0 }
0x2c90   : > { %6716 = vmatmul.mubr.msk.f32.vlgmr.msra.gmra.mrb[72].mxu0 %vm271_vm2, %v5718_v21 }
0x2d63   : > { %v5803_v23 = vpop.f32.mrb[72].mxu0 }
0x2d64   : > { %v5804_v25 = vadd.f32 %v5803_v23, %v5732_v22  ;;  %v6717_v27 = vpop.f32.mrb[73].mxu0 }
0x2d66   : > { %v5807_v38 = vmax.f32 %v5804_v25, 0.0 }
0x2d68   : > { %6727 = vmatmul.mubr.msk.f32.vlgmr.msra.gmra.mrb[68].mxu1 %vm271_vm2, %v5807_v38 }
0x2e3b   : > { %v5894_v0 = vpop.f32.mrb[68].mxu1 }
0x2e3c   : > { %v5895_v2 = vadd.f32 %v6114_v53, %v5894_v0  ;;  %v6728_v3 = vpop.f32.mrb[69].mxu1 }
0x2e3e   : > { %v5898_v28 = vmax.f32 %v5895_v2, 0.0 }
0x2e40   : > { %v5899_v29 = vsel %vm271_vm2, %v5898_v28, 0.0 }
0x2e41   : > { %5900 = vst [vmem:[%s173_s27] sm:$0xff] %v5899_v29 }
0x2e42   : > { %7086 = shalt.err (!%p7083_p7)
}
0x2e43   : > { %s7087_s20 = scalar_lea.hbm %s7953_s30, 128  ;;  %s7091_s18 = scalar_lea.hbm %s7999_s2, 512 }
0x2e44   : > { %p7088_p9 = scmp.ne.s32.totalorder %s7953_s30, %s7087_s20  ;;  %p7092_p0 = scmp.lt.u32.totalorder %s7953_s30, %s7999_s2 }
0x2e45   : > { %p7093_p10 = scmp.lt.u32.totalorder %s7091_s18, %s7087_s20  ;;  %p7095_p1 = scmp.lt.u32.totalorder %s7087_s20, %s7953_s30 }
0x2e46   : > { %p7089_p11 = pnand %p7088_p9, %p7270_p12 }
0x2e47   : > { %p7094_p2 = por %p7093_p10, %p7092_p0 }
0x2e48   : > { %p7090_p5 = pneg %p7089_p11 }
0x2e49   : > { %p7096_p4 = por %p7095_p1, %p7094_p2 }
0x2e4b   : > { %p7097_p6 = pnand %p7096_p4, %p7090_p5 }
0x2e4d   : > { %7100 = shalt.err (!%p7097_p6)
}
0x2e4e   : > { %6810 = dma.vmem_to_hbm [thread:$0]  (%p7270_p12), %s7955_s22, 128, %s7953_s30, %s5902_s3  }
0x2e4f PF: > { %p6827_p8 = scmp.ge.s32.totalorder %s7143_s12, 2  ;;  %s5927_s19 = sand.u32 1, %s7131_s9  }
0x2e50   : > { %p8028_p13 = scmp.ne.s32.totalorder %s8004_s16, 0  ;;  %s5928_s29 = scalar_lea.sflag [#allocation4], %s5927_s19 }
0x2e52   : > { %p6821_p3 = pnand %p6827_p8, %p8028_p13 }
0x2e54   : > { %7126 = dma.done.wait (!%p6821_p3), %s5928_s29, 128  }
0x2e55   : > { %7128 = vsyncadd (!%p6821_p3), %s5928_s29, 4294967168  ;;  %p16_p7 = scmp.ge.s32.totalorder %s7240_s21, 6   ;;  %s8029_s9 = smov %s7135_s10 }
0x2e56   : > { %s8030_s10 = smov %s7139_s11  ;;  %s8031_s11 = smov %s7266_s8 }
0x2e57   : > { %s8032_s12 = smov %s7240_s21  ;;  %18 = sbr.rel (!%p16_p7) target bundleno = 6 (0x6), region = 77 }
0x2e5e   :  { %5933 = vsyncpa [#allocation3], 1 }
0x2e5f   :  { %5935 = vsyncpa [#allocation3 + $0x1], 1 }
0x2e60   :  { %5936 = vsyncpa [#allocation6], 1 }
0x2e61   :  { %5937 = vsyncpa [#allocation4], 1 }
0x2e62   :  { %5939 = vsyncpa [#allocation4 + $0x1], 1 }

</bundles_post_ra>
